<compile_context>
chip_gen: v7x
topology: tpu7x:2x2x1
jax: 0.10.0
libtpu: 0.0.40
codegen_flags: <defaults>
</compile_context>

<pallas_src>
import functools

import jax
import jax.numpy as jnp
from jax.experimental import pallas as pl
from jax.experimental.pallas import tpu as pltpu

# ----------------------------- small ALBERT config -----------------------------
VOCAB = 100
TYPE_VOCAB = 2
MAX_POS = 16
EMB = 32          # ALBERT factorized embedding size
HID = 64          # hidden size (real model: 768)
HEADS = 4
DHEAD = HID // HEADS
INTER = 128       # intermediate size
LAYERS = 2        # number of (parameter-shared) encoder layers
NUM_LABELS = 9
LOGIT_PAD = 128   # lane-dense padded width for the classifier output
LN_EPS = 1e-12

_SQRT_2_OVER_PI = 0.7978845608028654


# ----------------------------- fused Pallas kernel -----------------------------
def _albert_fused_kernel(
    emb_ref, amask_ref,
    emb_ln_g_ref, emb_ln_b_ref,
    emb_map_w_ref, emb_map_b_ref,
    w_qkv_ref, b_qkv_ref,
    wo_ref, bo_ref,
    ln1_g_ref, ln1_b_ref,
    w_ffn_ref, b_ffn_ref,
    w_ffn_out_ref, b_ffn_out_ref,
    ln2_g_ref, ln2_b_ref,
    pool_w_ref, pool_b_ref,
    out_w_ref, out_b_ref,
    logits_ref,
    *, batch, seq,
):
    B, S = batch, seq

    def layernorm(x, g, b):
        mean = jnp.mean(x, axis=-1, keepdims=True)
        xc = x - mean
        var = jnp.mean(xc * xc, axis=-1, keepdims=True)
        return xc * jax.lax.rsqrt(var + LN_EPS) * g + b

    def gelu_new(y):
        # gelu_new (tanh approximation) -- AlbertConfig default hidden_act.
        return 0.5 * y * (1.0 + jnp.tanh(_SQRT_2_OVER_PI * (y + 0.044715 * y * y * y)))

    # ---- embeddings: LayerNorm + factorized embedding -> hidden projection ----
    emb = layernorm(emb_ref[...], emb_ln_g_ref[...], emb_ln_b_ref[...])
    h = (jnp.dot(emb, emb_map_w_ref[...], preferred_element_type=jnp.float32)
         + emb_map_b_ref[...])                                       # [B*S, HID]

    # additive attention mask, already broadcast + head-stacked in the wrapper:
    # loaded ONCE here and reused across layers (no per-loop broadcast_in_dim).
    amask = amask_ref[...]                                           # [HEADS*B, S, S]

    w_qkv, b_qkv = w_qkv_ref[...], b_qkv_ref[...]
    wo, bo = wo_ref[...], bo_ref[...]
    ln1_g, ln1_b = ln1_g_ref[...], ln1_b_ref[...]
    w_ffn, b_ffn = w_ffn_ref[...], b_ffn_ref[...]
    w_ffn_out, b_ffn_out = w_ffn_out_ref[...], b_ffn_out_ref[...]
    ln2_g, ln2_b = ln2_g_ref[...], ln2_b_ref[...]

    def split_heads(x2d):
        # [B*S, HID] -> [HEADS*B, S, DHEAD], heads stacked head-major along the
        # leading (batch) axis so attention is ONE batched einsum over all
        # (head, batch) pairs instead of B*HEADS tiny 2-D matmuls.
        x3 = x2d.reshape(B, S, HID)
        return jnp.concatenate(
            [x3[:, :, hd * DHEAD:(hd + 1) * DHEAD] for hd in range(HEADS)], axis=0)

    # ---- parameter-shared encoder layers (ALBERT weight sharing), unrolled ----
    for _ in range(LAYERS):
        # packed QKV: one lane-dense [B*S, 3*HID] matmul (scale pre-folded into Q)
        qkv = jnp.dot(h, w_qkv, preferred_element_type=jnp.float32) + b_qkv
        q_bh = split_heads(qkv[:, 0 * HID:1 * HID])                  # [HEADS*B, S, DHEAD]
        k_bh = split_heads(qkv[:, 1 * HID:2 * HID])
        v_bh = split_heads(qkv[:, 2 * HID:3 * HID])

        # batched scores + single stacked softmax over all heads/batches
        s = jnp.einsum("bqd,bkd->bqk", q_bh, k_bh,
                       preferred_element_type=jnp.float32)           # [HEADS*B, S, S]
        s = s + amask
        s = s - jnp.max(s, axis=-1, keepdims=True)
        p = jnp.exp(s)
        # EUP reciprocal instead of a VALU divide
        p = p * pl.reciprocal(jnp.sum(p, axis=-1, keepdims=True), approx=True)
        ctx_bh = jnp.einsum("bqk,bkd->bqd", p, v_bh,
                            preferred_element_type=jnp.float32)      # [HEADS*B, S, DHEAD]

        # merge heads back onto the lane axis: [HEADS*B, S, DHEAD] -> [B*S, HID]
        ctx = jnp.concatenate(
            [ctx_bh[hd * B:(hd + 1) * B] for hd in range(HEADS)], axis=-1)
        ctx = ctx.reshape(B * S, HID)

        attn_out = jnp.dot(ctx, wo, preferred_element_type=jnp.float32) + bo
        h = layernorm(attn_out + h, ln1_g, ln1_b)

        ffn = gelu_new(jnp.dot(h, w_ffn, preferred_element_type=jnp.float32)
                       + b_ffn)
        ffn_out = (jnp.dot(ffn, w_ffn_out, preferred_element_type=jnp.float32)
                   + b_ffn_out)
        h = layernorm(ffn_out + h, ln2_g, ln2_b)

    # ---- pooler (tanh on first token) + Dropout(0.3)=identity + classifier ----
    # NOTE: at B=2 the first-token gather is two sublane extracts; at real batch
    # sizes replace with a strided sublane select.
    first = jnp.concatenate([h[b * S:b * S + 1, :] for b in range(B)], axis=0)
    pooled = jnp.tanh(jnp.dot(first, pool_w_ref[...],
                              preferred_element_type=jnp.float32)
                      + pool_b_ref[...])
    # classifier weights zero-padded to 128 lanes -> lane-dense (unmasked) store
    logits_ref[...] = (jnp.dot(pooled, out_w_ref[...],
                               preferred_element_type=jnp.float32)
                       + out_b_ref[...])


# ----------------------------- parameters -----------------------------
def init_params(key):
    keys = iter(jax.random.split(key, 32))

    def nrm(shape):
        return (0.02 * jax.random.normal(next(keys), shape)).astype(jnp.float32)

    p = {
        # embeddings
        "word_emb": nrm((VOCAB, EMB)),
        "pos_emb": nrm((MAX_POS, EMB)),
        "tok_emb": nrm((TYPE_VOCAB, EMB)),
        "emb_ln_g": jnp.ones((EMB,), jnp.float32),
        "emb_ln_b": jnp.zeros((EMB,), jnp.float32),
        # factorized embedding -> hidden projection
        "emb_map_w": nrm((EMB, HID)),
        "emb_map_b": jnp.zeros((HID,), jnp.float32),
        # single shared encoder layer (ALBERT parameter sharing)
        "wq": nrm((HID, HID)), "bq": jnp.zeros((HID,), jnp.float32),
        "wk": nrm((HID, HID)), "bk": jnp.zeros((HID,), jnp.float32),
        "wv": nrm((HID, HID)), "bv": jnp.zeros((HID,), jnp.float32),
        "wo": nrm((HID, HID)), "bo": jnp.zeros((HID,), jnp.float32),
        "ln1_g": jnp.ones((HID,), jnp.float32), "ln1_b": jnp.zeros((HID,), jnp.float32),
        "w_ffn": nrm((HID, INTER)), "b_ffn": jnp.zeros((INTER,), jnp.float32),
        "w_ffn_out": nrm((INTER, HID)), "b_ffn_out": jnp.zeros((HID,), jnp.float32),
        "ln2_g": jnp.ones((HID,), jnp.float32), "ln2_b": jnp.zeros((HID,), jnp.float32),
        # pooler
        "pool_w": nrm((HID, HID)), "pool_b": jnp.zeros((HID,), jnp.float32),
        # classification head (self.out = nn.Linear(768, 9))
        "out_w": nrm((HID, NUM_LABELS)), "out_b": jnp.zeros((NUM_LABELS,), jnp.float32),
    }
    return p


def pack_params(p):
    """One-time parameter transform (hoisted OUT of the per-call forward).

    Packs QKV with the 1/sqrt(DHEAD) attention scale folded into the Q columns
    (weights and bias), reshapes biases / LN params to [1, F] lane rows, and
    zero-pads the classifier to 128 output lanes for a lane-dense store.
    """
    scale = 1.0 / float(DHEAD) ** 0.5
    w_qkv = jnp.concatenate([p["wq"] * scale, p["wk"], p["wv"]], axis=1)
    b_qkv = jnp.concatenate([p["bq"] * scale, p["bk"], p["bv"]],
                            axis=0).reshape(1, 3 * HID)
    out_w_pad = jnp.zeros((HID, LOGIT_PAD), jnp.float32).at[:, :NUM_LABELS].set(
        p["out_w"])
    out_b_pad = jnp.zeros((1, LOGIT_PAD), jnp.float32).at[:, :NUM_LABELS].set(
        p["out_b"])
    return {
        "word_emb": p["word_emb"], "pos_emb": p["pos_emb"], "tok_emb": p["tok_emb"],
        "emb_ln_g": p["emb_ln_g"].reshape(1, EMB),
        "emb_ln_b": p["emb_ln_b"].reshape(1, EMB),
        "emb_map_w": p["emb_map_w"],
        "emb_map_b": p["emb_map_b"].reshape(1, HID),
        "w_qkv": w_qkv, "b_qkv": b_qkv,
        "wo": p["wo"], "bo": p["bo"].reshape(1, HID),
        "ln1_g": p["ln1_g"].reshape(1, HID), "ln1_b": p["ln1_b"].reshape(1, HID),
        "w_ffn": p["w_ffn"], "b_ffn": p["b_ffn"].reshape(1, INTER),
        "w_ffn_out": p["w_ffn_out"],
        "b_ffn_out": p["b_ffn_out"].reshape(1, HID),
        "ln2_g": p["ln2_g"].reshape(1, HID), "ln2_b": p["ln2_b"].reshape(1, HID),
        "pool_w": p["pool_w"], "pool_b": p["pool_b"].reshape(1, HID),
        "out_w_pad": out_w_pad, "out_b_pad": out_b_pad,
    }


# ----------------------------- forward pass -----------------------------
def albert_base_japanese_forward(packed, ids, mask, token_type_ids):
    B, S = ids.shape
    assert S <= MAX_POS, "sequence length exceeds position-embedding table"

    # --- embedding gathers (plain-JAX glue) ---
    we = jnp.take(packed["word_emb"], ids, axis=0)                 # [B,S,E]
    pe = packed["pos_emb"][:S][None, :, :]                         # [1,S,E]
    te = jnp.take(packed["tok_emb"], token_type_ids, axis=0)       # [B,S,E]
    emb = (we + pe + te).reshape(B * S, EMB).astype(jnp.float32)

    # additive attention mask, built once per call, already broadcast to
    # [S, S] per batch and tiled head-major to match the kernel's
    # [HEADS*B, S, DHEAD] stacking (index = head*B + batch).
    amask = (1.0 - mask.astype(jnp.float32)) * -10000.0            # [B, S]
    amask = jnp.broadcast_to(amask[:, None, :], (B, S, S))         # [B, S, S]
    amask = jnp.tile(amask, (HEADS, 1, 1))                         # [HEADS*B, S, S]

    args = (
        emb, amask,
        packed["emb_ln_g"], packed["emb_ln_b"],
        packed["emb_map_w"], packed["emb_map_b"],
        packed["w_qkv"], packed["b_qkv"],
        packed["wo"], packed["bo"],
        packed["ln1_g"], packed["ln1_b"],
        packed["w_ffn"], packed["b_ffn"],
        packed["w_ffn_out"], packed["b_ffn_out"],
        packed["ln2_g"], packed["ln2_b"],
        packed["pool_w"], packed["pool_b"],
        packed["out_w_pad"], packed["out_b_pad"],
    )

    # Single invocation, grid=(): whole arrays resident in VMEM, no per-step
    # grid scaffolding and no index_map lambdas.
    logits_pad = pl.pallas_call(
        functools.partial(_albert_fused_kernel, batch=B, seq=S),
        out_shape=jax.ShapeDtypeStruct((B, LOGIT_PAD), jnp.float32),
        in_specs=[pl.BlockSpec(memory_space=pltpu.MemorySpace.VMEM)
                  for _ in range(len(args))],
        out_specs=pl.BlockSpec(memory_space=pltpu.MemorySpace.VMEM),
    )(*args)

    return logits_pad[:, :NUM_LABELS]


# ----------------------------- main -----------------------------
if __name__ == "__main__":
    key = jax.random.PRNGKey(0)
    kp, ki, km, kt = jax.random.split(key, 4)

    # one-time parameter packing (QKV concat + scale fold, classifier pad) --
    # NOT repeated per forward call.
    params = pack_params(init_params(kp))

    B, S = 2, 8
    ids = jax.random.randint(ki, (B, S), 0, VOCAB, dtype=jnp.int32)
    # attention mask: pad the last two positions of the second example
    mask = jnp.ones((B, S), dtype=jnp.int32)
    mask = mask.at[1, -2:].set(0)
    token_type_ids = jnp.zeros((B, S), dtype=jnp.int32)

    fwd = jax.jit(albert_base_japanese_forward)
    logits = fwd(params, ids, mask, token_type_ids)
    logits = jax.block_until_ready(logits)

    assert logits.shape == (B, NUM_LABELS)
    assert logits.dtype == jnp.float32
    assert bool(jnp.all(jnp.isfinite(logits)))
    print("KERNEL_OK")
</pallas_src>

<mosaic_0001>
module attributes {stable_mosaic.version = 11 : i64} {
  func.func @_albert_fused_kernel(%arg0: memref<16x32xf32, #tpu.memory_space<vmem>>, %arg1: memref<8x8x8xf32, #tpu.memory_space<vmem>>, %arg2: memref<1x32xf32, #tpu.memory_space<vmem>>, %arg3: memref<1x32xf32, #tpu.memory_space<vmem>>, %arg4: memref<32x64xf32, #tpu.memory_space<vmem>>, %arg5: memref<1x64xf32, #tpu.memory_space<vmem>>, %arg6: memref<64x192xf32, #tpu.memory_space<vmem>>, %arg7: memref<1x192xf32, #tpu.memory_space<vmem>>, %arg8: memref<64x64xf32, #tpu.memory_space<vmem>>, %arg9: memref<1x64xf32, #tpu.memory_space<vmem>>, %arg10: memref<1x64xf32, #tpu.memory_space<vmem>>, %arg11: memref<1x64xf32, #tpu.memory_space<vmem>>, %arg12: memref<64x128xf32, #tpu.memory_space<vmem>>, %arg13: memref<1x128xf32, #tpu.memory_space<vmem>>, %arg14: memref<128x64xf32, #tpu.memory_space<vmem>>, %arg15: memref<1x64xf32, #tpu.memory_space<vmem>>, %arg16: memref<1x64xf32, #tpu.memory_space<vmem>>, %arg17: memref<1x64xf32, #tpu.memory_space<vmem>>, %arg18: memref<64x64xf32, #tpu.memory_space<vmem>>, %arg19: memref<1x64xf32, #tpu.memory_space<vmem>>, %arg20: memref<64x128xf32, #tpu.memory_space<vmem>>, %arg21: memref<1x128xf32, #tpu.memory_space<vmem>>, %arg22: memref<2x128xf32, #tpu.memory_space<vmem>>) attributes {dimension_semantics = [], scalar_prefetch = 0 : i64, scratch_operands = 0 : i64, tpu.core_type = #tpu.core_type<tc>} {
    %c0 = arith.constant 0 : index
    %c0_0 = arith.constant 0 : index
    %0 = vector.load %arg0[%c0, %c0_0] : memref<16x32xf32, #tpu.memory_space<vmem>>, vector<16x32xf32>
    %c0_1 = arith.constant 0 : index
    %c0_2 = arith.constant 0 : index
    %1 = vector.load %arg2[%c0_1, %c0_2] : memref<1x32xf32, #tpu.memory_space<vmem>>, vector<1x32xf32>
    %c0_3 = arith.constant 0 : index
    %c0_4 = arith.constant 0 : index
    %2 = vector.load %arg3[%c0_3, %c0_4] : memref<1x32xf32, #tpu.memory_space<vmem>>, vector<1x32xf32>
    %cst = arith.constant dense<0.000000e+00> : vector<16xf32>
    %3 = vector.multi_reduction <add>, %0, %cst [1] : vector<16x32xf32> to vector<16xf32>
    %4 = vector.shape_cast %3 : vector<16xf32> to vector<16x1xf32>
    %cst_5 = arith.constant 3.200000e+01 : f32
    %5 = vector.broadcast %cst_5 : f32 to vector<16x1xf32>
    %6 = arith.divf %4, %5 : vector<16x1xf32>
    %7 = vector.broadcast %6 : vector<16x1xf32> to vector<16x32xf32>
    %8 = arith.subf %0, %7 : vector<16x32xf32>
    %9 = arith.mulf %8, %8 : vector<16x32xf32>
    %cst_6 = arith.constant dense<0.000000e+00> : vector<16xf32>
    %10 = vector.multi_reduction <add>, %9, %cst_6 [1] : vector<16x32xf32> to vector<16xf32>
    %11 = vector.shape_cast %10 : vector<16xf32> to vector<16x1xf32>
    %cst_7 = arith.constant 3.200000e+01 : f32
    %12 = vector.broadcast %cst_7 : f32 to vector<16x1xf32>
    %13 = arith.divf %11, %12 : vector<16x1xf32>
    %cst_8 = arith.constant 9.99999996E-13 : f32
    %14 = vector.broadcast %cst_8 : f32 to vector<16x1xf32>
    %15 = arith.addf %13, %14 : vector<16x1xf32>
    %16 = math.rsqrt %15 : vector<16x1xf32>
    %17 = vector.broadcast %16 : vector<16x1xf32> to vector<16x32xf32>
    %18 = arith.mulf %8, %17 : vector<16x32xf32>
    %19 = vector.broadcast %1 : vector<1x32xf32> to vector<16x32xf32>
    %20 = arith.mulf %18, %19 : vector<16x32xf32>
    %21 = vector.broadcast %2 : vector<1x32xf32> to vector<16x32xf32>
    %22 = arith.addf %20, %21 : vector<16x32xf32>
    %c0_9 = arith.constant 0 : index
    %c0_10 = arith.constant 0 : index
    %23 = vector.load %arg4[%c0_9, %c0_10] : memref<32x64xf32, #tpu.memory_space<vmem>>, vector<32x64xf32>
    %cst_11 = arith.constant dense<0.000000e+00> : vector<16x64xf32>
    %24 = tpu.matmul %22, %23, %cst_11 {dimension_numbers = #tpu.dot_dimension_numbers<[1], [0], [0], [1], [0, 0, 1, 1], [], []>} : vector<16x32xf32>, vector<32x64xf32>, vector<16x64xf32> -> vector<16x64xf32>
    %c0_12 = arith.constant 0 : index
    %c0_13 = arith.constant 0 : index
    %25 = vector.load %arg5[%c0_12, %c0_13] : memref<1x64xf32, #tpu.memory_space<vmem>>, vector<1x64xf32>
    %26 = vector.broadcast %25 : vector<1x64xf32> to vector<16x64xf32>
    %27 = arith.addf %24, %26 : vector<16x64xf32>
    %c0_14 = arith.constant 0 : index
    %c0_15 = arith.constant 0 : index
    %c0_16 = arith.constant 0 : index
    %28 = vector.load %arg1[%c0_14, %c0_15, %c0_16] : memref<8x8x8xf32, #tpu.memory_space<vmem>>, vector<8x8x8xf32>
    %c0_17 = arith.constant 0 : index
    %c0_18 = arith.constant 0 : index
    %29 = vector.load %arg6[%c0_17, %c0_18] : memref<64x192xf32, #tpu.memory_space<vmem>>, vector<64x192xf32>
    %c0_19 = arith.constant 0 : index
    %c0_20 = arith.constant 0 : index
    %30 = vector.load %arg7[%c0_19, %c0_20] : memref<1x192xf32, #tpu.memory_space<vmem>>, vector<1x192xf32>
    %c0_21 = arith.constant 0 : index
    %c0_22 = arith.constant 0 : index
    %31 = vector.load %arg8[%c0_21, %c0_22] : memref<64x64xf32, #tpu.memory_space<vmem>>, vector<64x64xf32>
    %c0_23 = arith.constant 0 : index
    %c0_24 = arith.constant 0 : index
    %32 = vector.load %arg9[%c0_23, %c0_24] : memref<1x64xf32, #tpu.memory_space<vmem>>, vector<1x64xf32>
    %c0_25 = arith.constant 0 : index
    %c0_26 = arith.constant 0 : index
    %33 = vector.load %arg10[%c0_25, %c0_26] : memref<1x64xf32, #tpu.memory_space<vmem>>, vector<1x64xf32>
    %c0_27 = arith.constant 0 : index
    %c0_28 = arith.constant 0 : index
    %34 = vector.load %arg11[%c0_27, %c0_28] : memref<1x64xf32, #tpu.memory_space<vmem>>, vector<1x64xf32>
    %c0_29 = arith.constant 0 : index
    %c0_30 = arith.constant 0 : index
    %35 = vector.load %arg12[%c0_29, %c0_30] : memref<64x128xf32, #tpu.memory_space<vmem>>, vector<64x128xf32>
    %c0_31 = arith.constant 0 : index
    %c0_32 = arith.constant 0 : index
    %36 = vector.load %arg13[%c0_31, %c0_32] : memref<1x128xf32, #tpu.memory_space<vmem>>, vector<1x128xf32>
    %c0_33 = arith.constant 0 : index
    %c0_34 = arith.constant 0 : index
    %37 = vector.load %arg14[%c0_33, %c0_34] : memref<128x64xf32, #tpu.memory_space<vmem>>, vector<128x64xf32>
    %c0_35 = arith.constant 0 : index
    %c0_36 = arith.constant 0 : index
    %38 = vector.load %arg15[%c0_35, %c0_36] : memref<1x64xf32, #tpu.memory_space<vmem>>, vector<1x64xf32>
    %c0_37 = arith.constant 0 : index
    %c0_38 = arith.constant 0 : index
    %39 = vector.load %arg16[%c0_37, %c0_38] : memref<1x64xf32, #tpu.memory_space<vmem>>, vector<1x64xf32>
    %c0_39 = arith.constant 0 : index
    %c0_40 = arith.constant 0 : index
    %40 = vector.load %arg17[%c0_39, %c0_40] : memref<1x64xf32, #tpu.memory_space<vmem>>, vector<1x64xf32>
    %cst_41 = arith.constant dense<0.000000e+00> : vector<16x192xf32>
    %41 = tpu.matmul %27, %29, %cst_41 {dimension_numbers = #tpu.dot_dimension_numbers<[1], [0], [0], [1], [0, 0, 1, 1], [], []>} : vector<16x64xf32>, vector<64x192xf32>, vector<16x192xf32> -> vector<16x192xf32>
    %42 = vector.broadcast %30 : vector<1x192xf32> to vector<16x192xf32>
    %43 = arith.addf %41, %42 : vector<16x192xf32>
    %44 = vector.extract_strided_slice %43 {offsets = [0, 0], sizes = [16, 64], strides = [1, 1]} : vector<16x192xf32> to vector<16x64xf32>
    %45 = vector.shape_cast %44 : vector<16x64xf32> to vector<2x8x64xf32>
    %46 = vector.extract_strided_slice %45 {offsets = [0, 0, 0], sizes = [2, 8, 16], strides = [1, 1, 1]} : vector<2x8x64xf32> to vector<2x8x16xf32>
    %47 = vector.extract_strided_slice %45 {offsets = [0, 0, 16], sizes = [2, 8, 16], strides = [1, 1, 1]} : vector<2x8x64xf32> to vector<2x8x16xf32>
    %48 = vector.extract_strided_slice %45 {offsets = [0, 0, 32], sizes = [2, 8, 16], strides = [1, 1, 1]} : vector<2x8x64xf32> to vector<2x8x16xf32>
    %49 = vector.extract_strided_slice %45 {offsets = [0, 0, 48], sizes = [2, 8, 16], strides = [1, 1, 1]} : vector<2x8x64xf32> to vector<2x8x16xf32>
    %50 = tpu.concatenate %46, %47, %48, %49 in 0 : vector<2x8x16xf32>, vector<2x8x16xf32>, vector<2x8x16xf32>, vector<2x8x16xf32> -> vector<8x8x16xf32>
    %51 = vector.extract_strided_slice %43 {offsets = [0, 64], sizes = [16, 64], strides = [1, 1]} : vector<16x192xf32> to vector<16x64xf32>
    %52 = vector.shape_cast %51 : vector<16x64xf32> to vector<2x8x64xf32>
    %53 = vector.extract_strided_slice %52 {offsets = [0, 0, 0], sizes = [2, 8, 16], strides = [1, 1, 1]} : vector<2x8x64xf32> to vector<2x8x16xf32>
    %54 = vector.extract_strided_slice %52 {offsets = [0, 0, 16], sizes = [2, 8, 16], strides = [1, 1, 1]} : vector<2x8x64xf32> to vector<2x8x16xf32>
    %55 = vector.extract_strided_slice %52 {offsets = [0, 0, 32], sizes = [2, 8, 16], strides = [1, 1, 1]} : vector<2x8x64xf32> to vector<2x8x16xf32>
    %56 = vector.extract_strided_slice %52 {offsets = [0, 0, 48], sizes = [2, 8, 16], strides = [1, 1, 1]} : vector<2x8x64xf32> to vector<2x8x16xf32>
    %57 = tpu.concatenate %53, %54, %55, %56 in 0 : vector<2x8x16xf32>, vector<2x8x16xf32>, vector<2x8x16xf32>, vector<2x8x16xf32> -> vector<8x8x16xf32>
    %58 = vector.extract_strided_slice %43 {offsets = [0, 128], sizes = [16, 64], strides = [1, 1]} : vector<16x192xf32> to vector<16x64xf32>
    %59 = vector.shape_cast %58 : vector<16x64xf32> to vector<2x8x64xf32>
    %60 = vector.extract_strided_slice %59 {offsets = [0, 0, 0], sizes = [2, 8, 16], strides = [1, 1, 1]} : vector<2x8x64xf32> to vector<2x8x16xf32>
    %61 = vector.extract_strided_slice %59 {offsets = [0, 0, 16], sizes = [2, 8, 16], strides = [1, 1, 1]} : vector<2x8x64xf32> to vector<2x8x16xf32>
    %62 = vector.extract_strided_slice %59 {offsets = [0, 0, 32], sizes = [2, 8, 16], strides = [1, 1, 1]} : vector<2x8x64xf32> to vector<2x8x16xf32>
    %63 = vector.extract_strided_slice %59 {offsets = [0, 0, 48], sizes = [2, 8, 16], strides = [1, 1, 1]} : vector<2x8x64xf32> to vector<2x8x16xf32>
    %64 = tpu.concatenate %60, %61, %62, %63 in 0 : vector<2x8x16xf32>, vector<2x8x16xf32>, vector<2x8x16xf32>, vector<2x8x16xf32> -> vector<8x8x16xf32>
    "tpu.trace_start"() <{level = 10 : i32, message = "bqd,bkd->bqk"}> : () -> ()
    %cst_42 = arith.constant dense<0.000000e+00> : vector<8x8x8xf32>
    %65 = tpu.matmul %50, %57, %cst_42 {dimension_numbers = #tpu.dot_dimension_numbers<[2], [2], [1], [1], [0, 0, 0, 1, 1, 1], [0], [0]>} : vector<8x8x16xf32>, vector<8x8x16xf32>, vector<8x8x8xf32> -> vector<8x8x8xf32>
    "tpu.trace_stop"() : () -> ()
    %66 = arith.addf %65, %28 : vector<8x8x8xf32>
    %cst_43 = arith.constant dense<0xFF800000> : vector<8x8xf32>
    %67 = vector.multi_reduction <maximumf>, %66, %cst_43 [2] : vector<8x8x8xf32> to vector<8x8xf32>
    %68 = vector.shape_cast %67 : vector<8x8xf32> to vector<8x8x1xf32>
    %69 = vector.broadcast %68 : vector<8x8x1xf32> to vector<8x8x8xf32>
    %70 = arith.subf %66, %69 : vector<8x8x8xf32>
    %71 = math.exp %70 : vector<8x8x8xf32>
    %cst_44 = arith.constant dense<0.000000e+00> : vector<8x8xf32>
    %72 = vector.multi_reduction <add>, %71, %cst_44 [2] : vector<8x8x8xf32> to vector<8x8xf32>
    %73 = vector.shape_cast %72 : vector<8x8xf32> to vector<8x8x1xf32>
    %74 = tpu.reciprocal %73 {approx = true} : vector<8x8x1xf32> -> vector<8x8x1xf32>
    %75 = vector.broadcast %74 : vector<8x8x1xf32> to vector<8x8x8xf32>
    %76 = arith.mulf %71, %75 : vector<8x8x8xf32>
    "tpu.trace_start"() <{level = 10 : i32, message = "bqk,bkd->bqd"}> : () -> ()
    %cst_45 = arith.constant dense<0.000000e+00> : vector<8x8x16xf32>
    %77 = tpu.matmul %76, %64, %cst_45 {dimension_numbers = #tpu.dot_dimension_numbers<[2], [1], [1], [2], [0, 0, 0, 1, 1, 2], [0], [0]>} : vector<8x8x8xf32>, vector<8x8x16xf32>, vector<8x8x16xf32> -> vector<8x8x16xf32>
    "tpu.trace_stop"() : () -> ()
    %78 = vector.extract_strided_slice %77 {offsets = [0, 0, 0], sizes = [2, 8, 16], strides = [1, 1, 1]} : vector<8x8x16xf32> to vector<2x8x16xf32>
    %79 = vector.extract_strided_slice %77 {offsets = [2, 0, 0], sizes = [2, 8, 16], strides = [1, 1, 1]} : vector<8x8x16xf32> to vector<2x8x16xf32>
    %80 = vector.extract_strided_slice %77 {offsets = [4, 0, 0], sizes = [2, 8, 16], strides = [1, 1, 1]} : vector<8x8x16xf32> to vector<2x8x16xf32>
    %81 = vector.extract_strided_slice %77 {offsets = [6, 0, 0], sizes = [2, 8, 16], strides = [1, 1, 1]} : vector<8x8x16xf32> to vector<2x8x16xf32>
    %82 = tpu.concatenate %78, %79, %80, %81 in 2 : vector<2x8x16xf32>, vector<2x8x16xf32>, vector<2x8x16xf32>, vector<2x8x16xf32> -> vector<2x8x64xf32>
    %83 = vector.shape_cast %82 : vector<2x8x64xf32> to vector<16x64xf32>
    %cst_46 = arith.constant dense<0.000000e+00> : vector<16x64xf32>
    %84 = tpu.matmul %83, %31, %cst_46 {dimension_numbers = #tpu.dot_dimension_numbers<[1], [0], [0], [1], [0, 0, 1, 1], [], []>} : vector<16x64xf32>, vector<64x64xf32>, vector<16x64xf32> -> vector<16x64xf32>
    %85 = vector.broadcast %32 : vector<1x64xf32> to vector<16x64xf32>
    %86 = arith.addf %84, %85 : vector<16x64xf32>
    %87 = arith.addf %86, %27 : vector<16x64xf32>
    %cst_47 = arith.constant dense<0.000000e+00> : vector<16xf32>
    %88 = vector.multi_reduction <add>, %87, %cst_47 [1] : vector<16x64xf32> to vector<16xf32>
    %89 = vector.shape_cast %88 : vector<16xf32> to vector<16x1xf32>
    %cst_48 = arith.constant 6.400000e+01 : f32
    %90 = vector.broadcast %cst_48 : f32 to vector<16x1xf32>
    %91 = arith.divf %89, %90 : vector<16x1xf32>
    %92 = vector.broadcast %91 : vector<16x1xf32> to vector<16x64xf32>
    %93 = arith.subf %87, %92 : vector<16x64xf32>
    %94 = arith.mulf %93, %93 : vector<16x64xf32>
    %cst_49 = arith.constant dense<0.000000e+00> : vector<16xf32>
    %95 = vector.multi_reduction <add>, %94, %cst_49 [1] : vector<16x64xf32> to vector<16xf32>
    %96 = vector.shape_cast %95 : vector<16xf32> to vector<16x1xf32>
    %cst_50 = arith.constant 6.400000e+01 : f32
    %97 = vector.broadcast %cst_50 : f32 to vector<16x1xf32>
    %98 = arith.divf %96, %97 : vector<16x1xf32>
    %cst_51 = arith.constant 9.99999996E-13 : f32
    %99 = vector.broadcast %cst_51 : f32 to vector<16x1xf32>
    %100 = arith.addf %98, %99 : vector<16x1xf32>
    %101 = math.rsqrt %100 : vector<16x1xf32>
    %102 = vector.broadcast %101 : vector<16x1xf32> to vector<16x64xf32>
    %103 = arith.mulf %93, %102 : vector<16x64xf32>
    %104 = vector.broadcast %33 : vector<1x64xf32> to vector<16x64xf32>
    %105 = arith.mulf %103, %104 : vector<16x64xf32>
    %106 = vector.broadcast %34 : vector<1x64xf32> to vector<16x64xf32>
    %107 = arith.addf %105, %106 : vector<16x64xf32>
    %cst_52 = arith.constant dense<0.000000e+00> : vector<16x128xf32>
    %108 = tpu.matmul %107, %35, %cst_52 {dimension_numbers = #tpu.dot_dimension_numbers<[1], [0], [0], [1], [0, 0, 1, 1], [], []>} : vector<16x64xf32>, vector<64x128xf32>, vector<16x128xf32> -> vector<16x128xf32>
    %109 = vector.broadcast %36 : vector<1x128xf32> to vector<16x128xf32>
    %110 = arith.addf %108, %109 : vector<16x128xf32>
    %cst_53 = arith.constant 5.000000e-01 : f32
    %111 = vector.broadcast %cst_53 : f32 to vector<16x128xf32>
    %112 = arith.mulf %111, %110 : vector<16x128xf32>
    %cst_54 = arith.constant 4.471500e-02 : f32
    %113 = vector.broadcast %cst_54 : f32 to vector<16x128xf32>
    %114 = arith.mulf %113, %110 : vector<16x128xf32>
    %115 = arith.mulf %114, %110 : vector<16x128xf32>
    %116 = arith.mulf %115, %110 : vector<16x128xf32>
    %117 = arith.addf %110, %116 : vector<16x128xf32>
    %cst_55 = arith.constant 0.797884583 : f32
    %118 = vector.broadcast %cst_55 : f32 to vector<16x128xf32>
    %119 = arith.mulf %118, %117 : vector<16x128xf32>
    %120 = math.tanh %119 : vector<16x128xf32>
    %cst_56 = arith.constant 1.000000e+00 : f32
    %121 = vector.broadcast %cst_56 : f32 to vector<16x128xf32>
    %122 = arith.addf %121, %120 : vector<16x128xf32>
    %123 = arith.mulf %112, %122 : vector<16x128xf32>
    %cst_57 = arith.constant dense<0.000000e+00> : vector<16x64xf32>
    %124 = tpu.matmul %123, %37, %cst_57 {dimension_numbers = #tpu.dot_dimension_numbers<[1], [0], [0], [1], [0, 0, 1, 1], [], []>} : vector<16x128xf32>, vector<128x64xf32>, vector<16x64xf32> -> vector<16x64xf32>
    %125 = vector.broadcast %38 : vector<1x64xf32> to vector<16x64xf32>
    %126 = arith.addf %124, %125 : vector<16x64xf32>
    %127 = arith.addf %126, %107 : vector<16x64xf32>
    %cst_58 = arith.constant dense<0.000000e+00> : vector<16xf32>
    %128 = vector.multi_reduction <add>, %127, %cst_58 [1] : vector<16x64xf32> to vector<16xf32>
    %129 = vector.shape_cast %128 : vector<16xf32> to vector<16x1xf32>
    %cst_59 = arith.constant 6.400000e+01 : f32
    %130 = vector.broadcast %cst_59 : f32 to vector<16x1xf32>
    %131 = arith.divf %129, %130 : vector<16x1xf32>
    %132 = vector.broadcast %131 : vector<16x1xf32> to vector<16x64xf32>
    %133 = arith.subf %127, %132 : vector<16x64xf32>
    %134 = arith.mulf %133, %133 : vector<16x64xf32>
    %cst_60 = arith.constant dense<0.000000e+00> : vector<16xf32>
    %135 = vector.multi_reduction <add>, %134, %cst_60 [1] : vector<16x64xf32> to vector<16xf32>
    %136 = vector.shape_cast %135 : vector<16xf32> to vector<16x1xf32>
    %cst_61 = arith.constant 6.400000e+01 : f32
    %137 = vector.broadcast %cst_61 : f32 to vector<16x1xf32>
    %138 = arith.divf %136, %137 : vector<16x1xf32>
    %cst_62 = arith.constant 9.99999996E-13 : f32
    %139 = vector.broadcast %cst_62 : f32 to vector<16x1xf32>
    %140 = arith.addf %138, %139 : vector<16x1xf32>
    %141 = math.rsqrt %140 : vector<16x1xf32>
    %142 = vector.broadcast %141 : vector<16x1xf32> to vector<16x64xf32>
    %143 = arith.mulf %133, %142 : vector<16x64xf32>
    %144 = vector.broadcast %39 : vector<1x64xf32> to vector<16x64xf32>
    %145 = arith.mulf %143, %144 : vector<16x64xf32>
    %146 = vector.broadcast %40 : vector<1x64xf32> to vector<16x64xf32>
    %147 = arith.addf %145, %146 : vector<16x64xf32>
    %cst_63 = arith.constant dense<0.000000e+00> : vector<16x192xf32>
    %148 = tpu.matmul %147, %29, %cst_63 {dimension_numbers = #tpu.dot_dimension_numbers<[1], [0], [0], [1], [0, 0, 1, 1], [], []>} : vector<16x64xf32>, vector<64x192xf32>, vector<16x192xf32> -> vector<16x192xf32>
    %149 = vector.broadcast %30 : vector<1x192xf32> to vector<16x192xf32>
    %150 = arith.addf %148, %149 : vector<16x192xf32>
    %151 = vector.extract_strided_slice %150 {offsets = [0, 0], sizes = [16, 64], strides = [1, 1]} : vector<16x192xf32> to vector<16x64xf32>
    %152 = vector.shape_cast %151 : vector<16x64xf32> to vector<2x8x64xf32>
    %153 = vector.extract_strided_slice %152 {offsets = [0, 0, 0], sizes = [2, 8, 16], strides = [1, 1, 1]} : vector<2x8x64xf32> to vector<2x8x16xf32>
    %154 = vector.extract_strided_slice %152 {offsets = [0, 0, 16], sizes = [2, 8, 16], strides = [1, 1, 1]} : vector<2x8x64xf32> to vector<2x8x16xf32>
    %155 = vector.extract_strided_slice %152 {offsets = [0, 0, 32], sizes = [2, 8, 16], strides = [1, 1, 1]} : vector<2x8x64xf32> to vector<2x8x16xf32>
    %156 = vector.extract_strided_slice %152 {offsets = [0, 0, 48], sizes = [2, 8, 16], strides = [1, 1, 1]} : vector<2x8x64xf32> to vector<2x8x16xf32>
    %157 = tpu.concatenate %153, %154, %155, %156 in 0 : vector<2x8x16xf32>, vector<2x8x16xf32>, vector<2x8x16xf32>, vector<2x8x16xf32> -> vector<8x8x16xf32>
    %158 = vector.extract_strided_slice %150 {offsets = [0, 64], sizes = [16, 64], strides = [1, 1]} : vector<16x192xf32> to vector<16x64xf32>
    %159 = vector.shape_cast %158 : vector<16x64xf32> to vector<2x8x64xf32>
    %160 = vector.extract_strided_slice %159 {offsets = [0, 0, 0], sizes = [2, 8, 16], strides = [1, 1, 1]} : vector<2x8x64xf32> to vector<2x8x16xf32>
    %161 = vector.extract_strided_slice %159 {offsets = [0, 0, 16], sizes = [2, 8, 16], strides = [1, 1, 1]} : vector<2x8x64xf32> to vector<2x8x16xf32>
    %162 = vector.extract_strided_slice %159 {offsets = [0, 0, 32], sizes = [2, 8, 16], strides = [1, 1, 1]} : vector<2x8x64xf32> to vector<2x8x16xf32>
    %163 = vector.extract_strided_slice %159 {offsets = [0, 0, 48], sizes = [2, 8, 16], strides = [1, 1, 1]} : vector<2x8x64xf32> to vector<2x8x16xf32>
    %164 = tpu.concatenate %160, %161, %162, %163 in 0 : vector<2x8x16xf32>, vector<2x8x16xf32>, vector<2x8x16xf32>, vector<2x8x16xf32> -> vector<8x8x16xf32>
    %165 = vector.extract_strided_slice %150 {offsets = [0, 128], sizes = [16, 64], strides = [1, 1]} : vector<16x192xf32> to vector<16x64xf32>
    %166 = vector.shape_cast %165 : vector<16x64xf32> to vector<2x8x64xf32>
    %167 = vector.extract_strided_slice %166 {offsets = [0, 0, 0], sizes = [2, 8, 16], strides = [1, 1, 1]} : vector<2x8x64xf32> to vector<2x8x16xf32>
    %168 = vector.extract_strided_slice %166 {offsets = [0, 0, 16], sizes = [2, 8, 16], strides = [1, 1, 1]} : vector<2x8x64xf32> to vector<2x8x16xf32>
    %169 = vector.extract_strided_slice %166 {offsets = [0, 0, 32], sizes = [2, 8, 16], strides = [1, 1, 1]} : vector<2x8x64xf32> to vector<2x8x16xf32>
    %170 = vector.extract_strided_slice %166 {offsets = [0, 0, 48], sizes = [2, 8, 16], strides = [1, 1, 1]} : vector<2x8x64xf32> to vector<2x8x16xf32>
    %171 = tpu.concatenate %167, %168, %169, %170 in 0 : vector<2x8x16xf32>, vector<2x8x16xf32>, vector<2x8x16xf32>, vector<2x8x16xf32> -> vector<8x8x16xf32>
    "tpu.trace_start"() <{level = 10 : i32, message = "bqd,bkd->bqk"}> : () -> ()
    %cst_64 = arith.constant dense<0.000000e+00> : vector<8x8x8xf32>
    %172 = tpu.matmul %157, %164, %cst_64 {dimension_numbers = #tpu.dot_dimension_numbers<[2], [2], [1], [1], [0, 0, 0, 1, 1, 1], [0], [0]>} : vector<8x8x16xf32>, vector<8x8x16xf32>, vector<8x8x8xf32> -> vector<8x8x8xf32>
    "tpu.trace_stop"() : () -> ()
    %173 = arith.addf %172, %28 : vector<8x8x8xf32>
    %cst_65 = arith.constant dense<0xFF800000> : vector<8x8xf32>
    %174 = vector.multi_reduction <maximumf>, %173, %cst_65 [2] : vector<8x8x8xf32> to vector<8x8xf32>
    %175 = vector.shape_cast %174 : vector<8x8xf32> to vector<8x8x1xf32>
    %176 = vector.broadcast %175 : vector<8x8x1xf32> to vector<8x8x8xf32>
    %177 = arith.subf %173, %176 : vector<8x8x8xf32>
    %178 = math.exp %177 : vector<8x8x8xf32>
    %cst_66 = arith.constant dense<0.000000e+00> : vector<8x8xf32>
    %179 = vector.multi_reduction <add>, %178, %cst_66 [2] : vector<8x8x8xf32> to vector<8x8xf32>
    %180 = vector.shape_cast %179 : vector<8x8xf32> to vector<8x8x1xf32>
    %181 = tpu.reciprocal %180 {approx = true} : vector<8x8x1xf32> -> vector<8x8x1xf32>
    %182 = vector.broadcast %181 : vector<8x8x1xf32> to vector<8x8x8xf32>
    %183 = arith.mulf %178, %182 : vector<8x8x8xf32>
    "tpu.trace_start"() <{level = 10 : i32, message = "bqk,bkd->bqd"}> : () -> ()
    %cst_67 = arith.constant dense<0.000000e+00> : vector<8x8x16xf32>
    %184 = tpu.matmul %183, %171, %cst_67 {dimension_numbers = #tpu.dot_dimension_numbers<[2], [1], [1], [2], [0, 0, 0, 1, 1, 2], [0], [0]>} : vector<8x8x8xf32>, vector<8x8x16xf32>, vector<8x8x16xf32> -> vector<8x8x16xf32>
    "tpu.trace_stop"() : () -> ()
    %185 = vector.extract_strided_slice %184 {offsets = [0, 0, 0], sizes = [2, 8, 16], strides = [1, 1, 1]} : vector<8x8x16xf32> to vector<2x8x16xf32>
    %186 = vector.extract_strided_slice %184 {offsets = [2, 0, 0], sizes = [2, 8, 16], strides = [1, 1, 1]} : vector<8x8x16xf32> to vector<2x8x16xf32>
    %187 = vector.extract_strided_slice %184 {offsets = [4, 0, 0], sizes = [2, 8, 16], strides = [1, 1, 1]} : vector<8x8x16xf32> to vector<2x8x16xf32>
    %188 = vector.extract_strided_slice %184 {offsets = [6, 0, 0], sizes = [2, 8, 16], strides = [1, 1, 1]} : vector<8x8x16xf32> to vector<2x8x16xf32>
    %189 = tpu.concatenate %185, %186, %187, %188 in 2 : vector<2x8x16xf32>, vector<2x8x16xf32>, vector<2x8x16xf32>, vector<2x8x16xf32> -> vector<2x8x64xf32>
    %190 = vector.shape_cast %189 : vector<2x8x64xf32> to vector<16x64xf32>
    %cst_68 = arith.constant dense<0.000000e+00> : vector<16x64xf32>
    %191 = tpu.matmul %190, %31, %cst_68 {dimension_numbers = #tpu.dot_dimension_numbers<[1], [0], [0], [1], [0, 0, 1, 1], [], []>} : vector<16x64xf32>, vector<64x64xf32>, vector<16x64xf32> -> vector<16x64xf32>
    %192 = vector.broadcast %32 : vector<1x64xf32> to vector<16x64xf32>
    %193 = arith.addf %191, %192 : vector<16x64xf32>
    %194 = arith.addf %193, %147 : vector<16x64xf32>
    %cst_69 = arith.constant dense<0.000000e+00> : vector<16xf32>
    %195 = vector.multi_reduction <add>, %194, %cst_69 [1] : vector<16x64xf32> to vector<16xf32>
    %196 = vector.shape_cast %195 : vector<16xf32> to vector<16x1xf32>
    %cst_70 = arith.constant 6.400000e+01 : f32
    %197 = vector.broadcast %cst_70 : f32 to vector<16x1xf32>
    %198 = arith.divf %196, %197 : vector<16x1xf32>
    %199 = vector.broadcast %198 : vector<16x1xf32> to vector<16x64xf32>
    %200 = arith.subf %194, %199 : vector<16x64xf32>
    %201 = arith.mulf %200, %200 : vector<16x64xf32>
    %cst_71 = arith.constant dense<0.000000e+00> : vector<16xf32>
    %202 = vector.multi_reduction <add>, %201, %cst_71 [1] : vector<16x64xf32> to vector<16xf32>
    %203 = vector.shape_cast %202 : vector<16xf32> to vector<16x1xf32>
    %cst_72 = arith.constant 6.400000e+01 : f32
    %204 = vector.broadcast %cst_72 : f32 to vector<16x1xf32>
    %205 = arith.divf %203, %204 : vector<16x1xf32>
    %cst_73 = arith.constant 9.99999996E-13 : f32
    %206 = vector.broadcast %cst_73 : f32 to vector<16x1xf32>
    %207 = arith.addf %205, %206 : vector<16x1xf32>
    %208 = math.rsqrt %207 : vector<16x1xf32>
    %209 = vector.broadcast %208 : vector<16x1xf32> to vector<16x64xf32>
    %210 = arith.mulf %200, %209 : vector<16x64xf32>
    %211 = vector.broadcast %33 : vector<1x64xf32> to vector<16x64xf32>
    %212 = arith.mulf %210, %211 : vector<16x64xf32>
    %213 = vector.broadcast %34 : vector<1x64xf32> to vector<16x64xf32>
    %214 = arith.addf %212, %213 : vector<16x64xf32>
    %cst_74 = arith.constant dense<0.000000e+00> : vector<16x128xf32>
    %215 = tpu.matmul %214, %35, %cst_74 {dimension_numbers = #tpu.dot_dimension_numbers<[1], [0], [0], [1], [0, 0, 1, 1], [], []>} : vector<16x64xf32>, vector<64x128xf32>, vector<16x128xf32> -> vector<16x128xf32>
    %216 = vector.broadcast %36 : vector<1x128xf32> to vector<16x128xf32>
    %217 = arith.addf %215, %216 : vector<16x128xf32>
    %cst_75 = arith.constant 5.000000e-01 : f32
    %218 = vector.broadcast %cst_75 : f32 to vector<16x128xf32>
    %219 = arith.mulf %218, %217 : vector<16x128xf32>
    %cst_76 = arith.constant 4.471500e-02 : f32
    %220 = vector.broadcast %cst_76 : f32 to vector<16x128xf32>
    %221 = arith.mulf %220, %217 : vector<16x128xf32>
    %222 = arith.mulf %221, %217 : vector<16x128xf32>
    %223 = arith.mulf %222, %217 : vector<16x128xf32>
    %224 = arith.addf %217, %223 : vector<16x128xf32>
    %cst_77 = arith.constant 0.797884583 : f32
    %225 = vector.broadcast %cst_77 : f32 to vector<16x128xf32>
    %226 = arith.mulf %225, %224 : vector<16x128xf32>
    %227 = math.tanh %226 : vector<16x128xf32>
    %cst_78 = arith.constant 1.000000e+00 : f32
    %228 = vector.broadcast %cst_78 : f32 to vector<16x128xf32>
    %229 = arith.addf %228, %227 : vector<16x128xf32>
    %230 = arith.mulf %219, %229 : vector<16x128xf32>
    %cst_79 = arith.constant dense<0.000000e+00> : vector<16x64xf32>
    %231 = tpu.matmul %230, %37, %cst_79 {dimension_numbers = #tpu.dot_dimension_numbers<[1], [0], [0], [1], [0, 0, 1, 1], [], []>} : vector<16x128xf32>, vector<128x64xf32>, vector<16x64xf32> -> vector<16x64xf32>
    %232 = vector.broadcast %38 : vector<1x64xf32> to vector<16x64xf32>
    %233 = arith.addf %231, %232 : vector<16x64xf32>
    %234 = arith.addf %233, %214 : vector<16x64xf32>
    %cst_80 = arith.constant dense<0.000000e+00> : vector<16xf32>
    %235 = vector.multi_reduction <add>, %234, %cst_80 [1] : vector<16x64xf32> to vector<16xf32>
    %236 = vector.shape_cast %235 : vector<16xf32> to vector<16x1xf32>
    %cst_81 = arith.constant 6.400000e+01 : f32
    %237 = vector.broadcast %cst_81 : f32 to vector<16x1xf32>
    %238 = arith.divf %236, %237 : vector<16x1xf32>
    %239 = vector.broadcast %238 : vector<16x1xf32> to vector<16x64xf32>
    %240 = arith.subf %234, %239 : vector<16x64xf32>
    %241 = arith.mulf %240, %240 : vector<16x64xf32>
    %cst_82 = arith.constant dense<0.000000e+00> : vector<16xf32>
    %242 = vector.multi_reduction <add>, %241, %cst_82 [1] : vector<16x64xf32> to vector<16xf32>
    %243 = vector.shape_cast %242 : vector<16xf32> to vector<16x1xf32>
    %cst_83 = arith.constant 6.400000e+01 : f32
    %244 = vector.broadcast %cst_83 : f32 to vector<16x1xf32>
    %245 = arith.divf %243, %244 : vector<16x1xf32>
    %cst_84 = arith.constant 9.99999996E-13 : f32
    %246 = vector.broadcast %cst_84 : f32 to vector<16x1xf32>
    %247 = arith.addf %245, %246 : vector<16x1xf32>
    %248 = math.rsqrt %247 : vector<16x1xf32>
    %249 = vector.broadcast %248 : vector<16x1xf32> to vector<16x64xf32>
    %250 = arith.mulf %240, %249 : vector<16x64xf32>
    %251 = vector.broadcast %39 : vector<1x64xf32> to vector<16x64xf32>
    %252 = arith.mulf %250, %251 : vector<16x64xf32>
    %253 = vector.broadcast %40 : vector<1x64xf32> to vector<16x64xf32>
    %254 = arith.addf %252, %253 : vector<16x64xf32>
    %255 = vector.extract_strided_slice %254 {offsets = [0, 0], sizes = [1, 64], strides = [1, 1]} : vector<16x64xf32> to vector<1x64xf32>
    %256 = vector.extract_strided_slice %254 {offsets = [8, 0], sizes = [1, 64], strides = [1, 1]} : vector<16x64xf32> to vector<1x64xf32>
    %257 = tpu.concatenate %255, %256 in 0 : vector<1x64xf32>, vector<1x64xf32> -> vector<2x64xf32>
    %c0_85 = arith.constant 0 : index
    %c0_86 = arith.constant 0 : index
    %258 = vector.load %arg18[%c0_85, %c0_86] : memref<64x64xf32, #tpu.memory_space<vmem>>, vector<64x64xf32>
    %cst_87 = arith.constant dense<0.000000e+00> : vector<2x64xf32>
    %259 = tpu.matmul %257, %258, %cst_87 {dimension_numbers = #tpu.dot_dimension_numbers<[1], [0], [0], [1], [0, 0, 1, 1], [], []>} : vector<2x64xf32>, vector<64x64xf32>, vector<2x64xf32> -> vector<2x64xf32>
    %c0_88 = arith.constant 0 : index
    %c0_89 = arith.constant 0 : index
    %260 = vector.load %arg19[%c0_88, %c0_89] : memref<1x64xf32, #tpu.memory_space<vmem>>, vector<1x64xf32>
    %261 = vector.broadcast %260 : vector<1x64xf32> to vector<2x64xf32>
    %262 = arith.addf %259, %261 : vector<2x64xf32>
    %263 = math.tanh %262 : vector<2x64xf32>
    %c0_90 = arith.constant 0 : index
    %c0_91 = arith.constant 0 : index
    %264 = vector.load %arg20[%c0_90, %c0_91] : memref<64x128xf32, #tpu.memory_space<vmem>>, vector<64x128xf32>
    %cst_92 = arith.constant dense<0.000000e+00> : vector<2x128xf32>
    %265 = tpu.matmul %263, %264, %cst_92 {dimension_numbers = #tpu.dot_dimension_numbers<[1], [0], [0], [1], [0, 0, 1, 1], [], []>} : vector<2x64xf32>, vector<64x128xf32>, vector<2x128xf32> -> vector<2x128xf32>
    %c0_93 = arith.constant 0 : index
    %c0_94 = arith.constant 0 : index
    %266 = vector.load %arg21[%c0_93, %c0_94] : memref<1x128xf32, #tpu.memory_space<vmem>>, vector<1x128xf32>
    %267 = vector.broadcast %266 : vector<1x128xf32> to vector<2x128xf32>
    %268 = arith.addf %265, %267 : vector<2x128xf32>
    %c0_95 = arith.constant 0 : index
    %c0_96 = arith.constant 0 : index
    %269 = vector.load %arg22[%c0_95, %c0_96] : memref<2x128xf32, #tpu.memory_space<vmem>>, vector<2x128xf32>
    tpu.vector_store %arg22[%c0_95, %c0_96], %268 {strides = array<i32>} : memref<2x128xf32, #tpu.memory_space<vmem>>, vector<2x128xf32>,
    return
  }
}

</mosaic_0001>

<bundles_post_ra>
// kernel: albert_base_japanese_forward.1
= control target key start
LH: loop header
LB: loop body
LE: loop exit
PB: predicated region body
PF: predicated region fallthrough
CT: control target
= control target key end

     0   :  { %s5915_s0 = inlined_call_operand.vmem [shape: f32[16,32], index: 0, kind: input, shape index: {}]   ;;  %s5916_s1 = inlined_call_operand.vmem [shape: f32[8,8,8], index: 1, kind: input, shape index: {}]   ;;  %s5917_s2 = inlined_call_operand.vmem [shape: f32[1,32], index: 2, kind: input, shape index: {}]   ;;  %s5918_s3 = inlined_call_operand.vmem [shape: f32[1,32], index: 3, kind: input, shape index: {}]   ;;  %s5919_s4 = inlined_call_operand.vmem [shape: f32[32,64], index: 4, kind: input, shape index: {}]   ;;  %s5920_s5 = inlined_call_operand.vmem [shape: f32[1,64], index: 5, kind: input, shape index: {}]   ;;  %s5921_s6 = inlined_call_operand.vmem [shape: f32[64,192], index: 6, kind: input, shape index: {}]   ;;  %s5922_s7 = inlined_call_operand.vmem [shape: f32[1,192], index: 7, kind: input, shape index: {}]   ;;  %s5923_s8 = inlined_call_operand.vmem [shape: f32[64,64], index: 8, kind: input, shape index: {}]   ;;  %s5924_s9 = inlined_call_operand.vmem [shape: f32[1,64], index: 9, kind: input, shape index: {}]   ;;  %s5925_s10 = inlined_call_operand.vmem [shape: f32[1,64], index: 10, kind: input, shape index: {}]   ;;  %s5926_s11 = inlined_call_operand.vmem [shape: f32[1,64], index: 11, kind: input, shape index: {}]   ;;  %s5927_s12 = inlined_call_operand.vmem [shape: f32[64,128], index: 12, kind: input, shape index: {}]   ;;  %s5928_s13 = inlined_call_operand.vmem [shape: f32[1,128], index: 13, kind: input, shape index: {}]   ;;  %s5929_s14 = inlined_call_operand.vmem [shape: f32[128,64], index: 14, kind: input, shape index: {}]   ;;  %s5930_s15 = inlined_call_operand.vmem [shape: f32[1,64], index: 15, kind: input, shape index: {}]   ;;  %s5931_s16 = inlined_call_operand.vmem [shape: f32[1,64], index: 16, kind: input, shape index: {}]   ;;  %s5932_s17 = inlined_call_operand.vmem [shape: f32[1,64], index: 17, kind: input, shape index: {}]   ;;  %s5933_s18 = inlined_call_operand.vmem [shape: f32[64,64], index: 18, kind: input, shape index: {}]   ;;  %s5934_s19 = inlined_call_operand.vmem [shape: f32[1,64], index: 19, kind: input, shape index: {}]   ;;  %s5935_s20 = inlined_call_operand.vmem [shape: f32[64,128], index: 20, kind: input, shape index: {}]   ;;  %s5936_s21 = inlined_call_operand.vmem [shape: f32[1,128], index: 21, kind: input, shape index: {}]   ;;  %s5937_s22 = inlined_call_operand.hbm [shape: f32[2,128], index: 22, kind: output, shape index: {}]  }
   0x1   :  { %5942 = sst [smem:[#allocation5_spill]] %s5915_s0 }
   0x2   :  { %5943 = sst [smem:[#allocation6_spill]] %s5916_s1 }
   0x3   :  { %5944 = sst [smem:[#allocation7_spill]] %s5917_s2 }
   0x4   :  { %5945 = sst [smem:[#allocation8_spill]] %s5918_s3 }
   0x5   :  { %5946 = sst [smem:[#allocation9_spill]] %s5919_s4 }
   0x6   :  { %5947 = sst [smem:[#allocation10_spill]] %s5920_s5 }
   0x7   :  { %5948 = sst [smem:[#allocation11_spill]] %s5921_s6 }
   0x8   :  { %s5949_s29 = sld [smem:[#allocation5_spill]]  ;;  %vm76_vm0 = vcmask 261120  }
   0xe   :  { %v72_v0 = vld [vmem:[%s5949_s29] sm:$0xff]  ;;  %v73_v1 = vld [vmem:[%s5949_s29 + $0x8] sm:$0xff] }
   0xf   :  { %27 = vsyncpa [#allocation3], 0  ;;  %v77_v2 = vsel %vm76_vm0, %v72_v0, 0.0  ;;  %v80_v3 = vsel %vm76_vm0, %v73_v1, 0.0  ;;  %s5950_s1 = sld [smem:[#allocation9_spill]]  ;;  %s5951_s28 = sld [smem:[#allocation11_spill]] }
  0x10   :  { %78 = vadd.xlane.f32.xlu0 %v77_v2  ;;  %s5952_s26 = sld [smem:[#allocation7_spill]]  ;;  %s5953_s3 = sld [smem:[#allocation8_spill]]  ;;  %v4939_v60 = vmov 0.0   ;;  %vm287_vm1 = vcmask 523264   ;;  %v277_v2 = vlaneseq  ;;  %vm4940_vm2 = vmmov 0  }
  0x11   :  { %358 = vmatprep.mubr.f32.mxu1 %v4939_v60  ;;  %s4941_s27 = smov 96   ;;  %s4944_s29 = smov 64   ;;  %vm407_vm3 = vcmask 130048   ;;  %vm1014_vm4 = vcmask 64512   ;;  %vm1715_vm5 = vcmask 392192   ;;  %vm3829_vm6 = vcmask 1040384  }
  0x12   :  { %s5955_s0 = sld [smem:[#allocation6_spill]] }
  0x14   :  { %81 = vadd.xlane.f32.xlu0 %v80_v3  ;;  %v278_v3 = vshrl.u32 %v277_v2, 7 }
  0x15   :  { %v120_v14 = vld [vmem:[%s5950_s1] sm:$0xff]  ;;  %v121_v15 = vld [vmem:[%s5950_s1 + $0x8] sm:$0xff]  ;;  %v122_v16 = vld [vmem:[%s5950_s1 + $0x10] sm:$0xff] }
  0x16   :  { %v4618_v17 = vpack.c.bf16 %v121_v15, %v120_v14  ;;  %v123_v18 = vld [vmem:[%s5950_s1 + $0x18] sm:$0xff]  ;;  %v221_v20 = vld [vmem:[%s5951_s28 + $0x8] sm:$0xff]  ;;  %v220_v22 = vld [vmem:[%s5951_s28] sm:$0xff] }
  0x17   :  { %v4622_v19 = vpack.c.bf16 %v123_v18, %v122_v16  ;;  %v223_v21 = vld [vmem:[%s5951_s28 + $0x18] sm:$0xff]  ;;  %v222_v24 = vld [vmem:[%s5951_s28 + $0x10] sm:$0xff]  ;;  %v225_v25 = vld [vmem:[%s5951_s28 + $0x28] sm:$0xff] }
  0x18   :  { %4619 = vmatprep.subr.bf16.mxu0 %v4618_v17  ;;  %v5096_v23 = vpack.c.bf16 %v223_v21, %v221_v20  ;;  %v227_v26 = vld [vmem:[%s5951_s28 + $0x38] sm:$0xff]  ;;  %v5107_v27 = vpack.c.bf16 %v222_v24, %v220_v22  ;;  %v224_v29 = vld [vmem:[%s5951_s28 + $0x20] sm:$0xff]  ;;  %v226_v30 = vld [vmem:[%s5951_s28 + $0x30] sm:$0xff]  ;;  %v283_v22 = vsub.s32 1, %v278_v3 }
  0x19   :  { %4621 = vmatpush3.bf16.msra.mxu0 %v4618_v17  ;;  %v5109_v28 = vpack.c.bf16 %v227_v26, %v225_v25  ;;  %v229_v31 = vld [vmem:[%s5951_s28 + $0x48] sm:$0xff]  ;;  %v231_v32 = vld [vmem:[%s5951_s28 + $0x58] sm:$0xff]  ;;  %v5125_v33 = vpack.c.bf16 %v226_v30, %v224_v29  ;;  %v228_v35 = vld [vmem:[%s5951_s28 + $0x40] sm:$0xff] }
  0x1a   :  { %4623 = vmatprep.subr.bf16.mxu0 %v4622_v19  ;;  %4627 = vmatprep.subr.bf16.mxu1 %v5096_v23  ;;  %v5128_v34 = vpack.c.bf16 %v231_v32, %v229_v31  ;;  %v230_v36 = vld [vmem:[%s5951_s28 + $0x50] sm:$0xff]  ;;  %v4023_v45 = vld [vmem:[%s5952_s26] ss:$0 sm:$0xff]  ;;  %v233_v54 = vld [vmem:[%s5951_s28 + $0x68] sm:$0xff]  ;;  %s5954_s26 = sld [smem:[#allocation10_spill]] }
  0x1b   :  { %4629 = vmatpush1.bf16.msra.mxu1 %v5107_v27  ;;  %v5137_v37 = vpack.c.bf16 %v230_v36, %v228_v35  ;;  %v4024_v47 = vld [vmem:[%s5953_s3] ss:$0 sm:$0xff]  ;;  %v235_v55 = vld [vmem:[%s5951_s28 + $0x78] sm:$0xff]  ;;  %v234_v58 = vld [vmem:[%s5951_s28 + $0x70] sm:$0xff]  ;;  %s4942_s3 = smov 112  }
  0x1c   :  { %4631 = vmatprep.subr.bf16.mxu1 %v5109_v28  ;;  %v5155_v56 = vpack.c.bf16 %v235_v55, %v233_v54  ;;  %v232_v57 = vld [vmem:[%s5951_s28 + $0x60] sm:$0xff]  ;;  %s4946_s28 = smov 32  }
  0x1d   :  { %4625 = vmatpush3.bf16.msra.mxu0 %v4622_v19  ;;  %v5163_v59 = vpack.c.bf16 %v234_v58, %v232_v57  ;;  %v5265_v36 = vld [vmem:[%s5955_s0] sm:$0xff] }
  0x1e   :  { %4274 = vmatprep.subr.mxu0 %v4939_v60  ;;  %v5291_v54 = vld [vmem:[%s5955_s0 + $0x20] sm:$0xff] }
  0x1f   :  { %4633 = vmatpush1.bf16.msra.mxu1 %v5125_v33 }
  0x20   :  { %4635 = vmatprep.subr.bf16.mxu1 %v5128_v34  ;;  %v4025_v61 = vld [vmem:[%s5954_s26] ss:$0 sm:$0xff]  ;;  %s4945_s26 = smov 16  }
  0x23   :  { %4637 = vmatpush1.bf16.msra.mxu1 %v5137_v37 }
  0x24   :  { %4639 = vmatprep.subr.bf16.mxu1 %v5155_v56 }
  0x27   :  { %4641 = vmatpush1.bf16.msra.mxu1 %v5163_v59 }
  0x28   :  { %4294 = vmatprep.subr.mxu1 %v4939_v60 }
  0x9d   :  { %v79_v4 = vpop.xlane.xlu0 %78 }
  0x9e   :  { %v84_v5 = vmul.f32 0.03125, %v79_v4  ;;  %v279_v4 = vsub.s32 0, %v278_v3 }
  0xa0   :  { %v86_v6 = vsub.f32 %v72_v0, %v84_v5  ;;  %v236_v5 = vld [vmem:[%s5922_s7] sm:$0x3]  ;;  %s4943_s7 = smov 80  }
  0xa1   :  { %v82_v7 = vpop.xlane.xlu0 %81  ;;  %v5227_v26 = vrot.slane %v236_v5, %v283_v22 }
  0xa2   :  { %v85_v8 = vmul.f32 0.03125, %v82_v7  ;;  %v88_v9 = vmul.f32 %v86_v6, %v86_v6 }
  0xa4   :  { %v87_v10 = vsub.f32 %v73_v1, %v85_v8  ;;  %v90_v11 = vsel %vm76_vm0, %v88_v9, 0.0 }
  0xa5   :  { %91 = vadd.xlane.f32.xlu1 %v90_v11 }
  0xa6   :  { %v89_v12 = vmul.f32 %v87_v10, %v87_v10 }
  0xa8   :  { %v93_v13 = vsel %vm76_vm0, %v89_v12, 0.0 }
  0xa9   :  { %94 = vadd.xlane.f32.xlu1 %v93_v13 }
 0x132   :  { %v92_v38 = vpop.xlane.xlu1 %91 }
 0x133   :  { %v96_v39 = vmul.f32 0.03125, %v92_v38 }
 0x135   :  { %v98_v40 = vadd.f32 1e-12, %v96_v39 }
 0x136   :  { %v95_v41 = vpop.xlane.xlu1 %94 }
 0x137   :  { %4821 = vrsqrt.f32 %v98_v40  ;;  %v97_v42 = vmul.f32 0.03125, %v95_v41 }
 0x139   :  { %v99_v43 = vadd.f32 1e-12, %v97_v42  ;;  %v5272_v42 = vld [vmem:[%s5955_s0 + $0x8] sm:$0xff] }
 0x13b   :  { %4823 = vrsqrt.f32 %v99_v43 }
 0x141   :  { %v4822_v44 = vpop.eup %4821 }
 0x142   :  { %v102_v46 = vmul.f32 %v4822_v44, %v86_v6  ;;  %v5185_v6 = vrot.slane %v236_v5, %v279_v4  ;;  %v5304_v4 = vld [vmem:[%s5955_s0 + $0x30] sm:$0xff] }
 0x144   :  { %v110_v48 = vmul.f32 %v4023_v45, %v102_v46 }
 0x145   :  { %v4824_v49 = vpop.eup %4823 }
 0x146   :  { %v103_v50 = vmul.f32 %v4824_v49, %v87_v10  ;;  %v118_v51 = vadd.f32 %v4024_v47, %v110_v48 }
 0x148   :  { %v111_v52 = vmul.f32 %v4023_v45, %v103_v50  ;;  %4271 = vmatprep.mubr.msk.f32.mxu0 %vm76_vm0, %v118_v51  ;;  %v5285_v51 = vld [vmem:[%s5955_s0 + $0x18] sm:$0xff] }
 0x14a   :  { %v119_v53 = vadd.f32 %v4024_v47, %v111_v52  ;;  %v5279_v47 = vld [vmem:[%s5955_s0 + $0x10] sm:$0xff] }
 0x14c   :  { %4272 = vmatmul.mubr.msk.f32.vlgmr.msra.gmra.mrb[0].mxu0 %vm76_vm0, %v119_v53 }
 0x14d   :  { %4276 = vmatprep.mubr.msk.f32.mxu0 %vm4940_vm2, %v4939_v60 }
 0x21f   :  { %v4273_v62 = vpop.f32.mrb[0].mxu0 }
 0x220   :  { %v203_v63 = vpop.f32.mrb[1].mxu0  ;;  %v5178_v1 = vadd.f32 %v4273_v62, %v4025_v61  ;;  %v5297_v62 = vld [vmem:[%s5955_s0 + $0x28] sm:$0xff] }
 0x221   :  { %v5173_v0 = vadd.f32 %v4025_v61, %v203_v63 }
 0x223   :  { %4028 = vmatmul.mubr.msk.f32.vlgmr.msra.gmra.mrb[0].mxu1 %vm287_vm1, %v5173_v0 }
 0x224   :  { %364 = vmatprep.mubr.f32.mxu1 %v4939_v60 }
 0x227   :  { %4029 = vmatmul.mubr.msk.f32.gmra.mrb[2].mxu1 %vm287_vm1, %v5178_v1 }
 0x228   :  { %4296 = vmatprep.mubr.msk.f32.mxu1 %vm4940_vm2, %v4939_v60 }
 0x2f6   :  { %v360_v7 = vpop.f32.mrb[0].mxu1 }
 0x2f7   :  { %v361_v8 = vadd.f32 %v360_v7, %v5185_v6  ;;  %v362_v9 = vpop.f32.mrb[1].mxu1 }
 0x2f8   :  { %v5239_v31 = vadd.f32 %v362_v9, %v5227_v26 }
 0x2f9   :  { %377 = vrot.lane.b32.xlu1 %v361_v8, %s4941_s27  ;;  %373 = vrot.lane.b32.xlu0 %v361_v8, %s4942_s3 }
 0x2fa   :  { %v366_v10 = vpop.f32.mrb[2].mxu1 }
 0x2fb   :  { %v367_v11 = vadd.f32 %v366_v10, %v5185_v6  ;;  %v5195_v12 = vpop.f32.mrb[3].mxu1  ;;  %v5310_v10 = vld [vmem:[%s5955_s0 + $0x38] sm:$0xff] }
 0x2fc   :  { %v5252_v35 = vadd.f32 %v5195_v12, %v5227_v26 }
 0x2fd   :  { %375 = vrot.lane.b32.xlu1 %v367_v11, %s4942_s3  ;;  %381 = vrot.lane.b32.xlu0 %v361_v8, %s4943_s7 }
 0x301   :  { %379 = vrot.lane.b32.xlu1 %v367_v11, %s4941_s27  ;;  %405 = vrot.lane.b32.xlu0 %v361_v8, %s4944_s29 }
 0x305   :  { %383 = vrot.lane.b32.xlu1 %v367_v11, %s4943_s7 }
 0x309   :  { %482 = vrot.lane.b32.xlu1 %v367_v11, %s4944_s29 }
 0x36b   :  { %v378_v13 = vpop.permute.xlu1 %377  ;;  %v374_v14 = vpop.permute.xlu0 %373 }
 0x36c   :  { %558 = vrot.lane.b32.xlu0 %v374_v14, %s4944_s29 }
 0x36f   :  { %v376_v15 = vpop.permute.xlu1 %375  ;;  %v382_v16 = vpop.permute.xlu0 %381 }
 0x370   :  { %634 = vrot.lane.b32.xlu1 %v376_v15, %s4944_s29  ;;  %710 = vrot.lane.b32.xlu0 %v378_v13, %s4944_s29 }
 0x373   :  { %v380_v17 = vpop.permute.xlu1 %379  ;;  %v406_v18 = vpop.permute.xlu0 %405 }
 0x374   :  { %786 = vrot.lane.b32.xlu1 %v380_v17, %s4944_s29  ;;  %862 = vrot.lane.b32.xlu0 %v382_v16, %s4944_s29 }
 0x375   :  { %4275 = vmatpush3.xpose.msk.msra.mxu0 %vm407_vm3, %v406_v18 }
 0x376   :  { %4279 = vmatprep.subr.mxu0 %v4939_v60 }
 0x377   :  { %v384_v19 = vpop.permute.xlu1 %383 }
 0x378   :  { %4277 = vmatmul.mubr.msk.f32.vlgmr.msra.gmra.mrb[2].mxu0 %vm407_vm3, %v361_v8  ;;  %938 = vrot.lane.b32.xlu1 %v384_v19, %s4944_s29 }
 0x379   :  { %4281 = vmatprep.mubr.msk.f32.mxu0 %vm4940_vm2, %v4939_v60 }
 0x37b   :  { %v483_v20 = vpop.permute.xlu1 %482 }
 0x37c   :  { %4280 = vmatpush3.xpose.msk.msra.mxu0 %vm407_vm3, %v483_v20 }
 0x37d   :  { %4284 = vmatprep.subr.mxu0 %v4939_v60 }
 0x37f   :  { %4282 = vmatmul.mubr.msk.f32.vlgmr.msra.gmra.mrb[4].mxu0 %vm407_vm3, %v367_v11 }
 0x380   :  { %4286 = vmatprep.mubr.msk.f32.mxu0 %vm4940_vm2, %v4939_v60 }
 0x3de   :  { %v559_v21 = vpop.permute.xlu0 %558 }
 0x3df   :  { %4285 = vmatpush3.xpose.msk.msra.mxu0 %vm407_vm3, %v559_v21 }
 0x3e0   :  { %4289 = vmatprep.subr.mxu0 %v4939_v60 }
 0x3e2   :  { %v635_v24 = vpop.permute.xlu1 %634  ;;  %4287 = vmatmul.mubr.msk.f32.vlgmr.msra.gmra.mrb[6].mxu0 %vm407_vm3, %v374_v14  ;;  %v711_v25 = vpop.permute.xlu0 %710 }
 0x3e3   :  { %4290 = vmatpush3.xpose.msk.msra.mxu0 %vm407_vm3, %v635_v24  ;;  %4295 = vmatpush3.xpose.msk.msra.mxu1 %vm407_vm3, %v711_v25 }
 0x3e4   :  { %4291 = vmatprep.mubr.msk.f32.mxu0 %vm4940_vm2, %v4939_v60  ;;  %4299 = vmatprep.subr.mxu0 %v4939_v60 }
 0x3e5   :  { %4304 = vmatprep.subr.mxu1 %v4939_v60 }
 0x3e6   :  { %v787_v29 = vpop.permute.xlu1 %786  ;;  %4292 = vmatmul.mubr.msk.f32.vlgmr.msra.gmra.mrb[8].mxu0 %vm407_vm3, %v376_v15  ;;  %4297 = vmatmul.mubr.msk.f32.vlgmr.msra.gmra.mrb[4].mxu1 %vm407_vm3, %v378_v13  ;;  %v863_v30 = vpop.permute.xlu0 %862 }
 0x3e7   :  { %4300 = vmatpush3.xpose.msk.msra.mxu0 %vm407_vm3, %v787_v29  ;;  %4305 = vmatpush3.xpose.msk.msra.mxu1 %vm407_vm3, %v863_v30 }
 0x3e8   :  { %4301 = vmatprep.mubr.msk.f32.mxu0 %vm4940_vm2, %v4939_v60  ;;  %4306 = vmatprep.mubr.msk.f32.mxu1 %vm4940_vm2, %v4939_v60 }
 0x3e9   :  { %4309 = vmatprep.subr.mxu0 %v4939_v60  ;;  %4314 = vmatprep.subr.mxu1 %v4939_v60 }
 0x3ea   :  { %v939_v32 = vpop.permute.xlu1 %938  ;;  %4302 = vmatmul.mubr.msk.f32.vlgmr.msra.gmra.mrb[10].mxu0 %vm407_vm3, %v380_v17  ;;  %4307 = vmatmul.mubr.msk.f32.vlgmr.msra.gmra.mrb[6].mxu1 %vm407_vm3, %v382_v16 }
 0x3eb   :  { %4310 = vmatpush3.xpose.msk.msra.mxu0 %vm407_vm3, %v939_v32  ;;  %4315 = vmatpush3.msra.mxu1 %v5239_v31 }
 0x3ec   :  { %4311 = vmatprep.mubr.msk.f32.mxu0 %vm4940_vm2, %v4939_v60  ;;  %4319 = vmatprep.subr.mxu0 %v4939_v60 }
 0x3ed   :  { %4316 = vmatprep.mubr.msk.f32.mxu1 %vm4940_vm2, %v4939_v60  ;;  %4324 = vmatprep.subr.mxu1 %v4939_v60 }
 0x3ee   :  { %4312 = vmatmul.mubr.msk.f32.vlgmr.msra.gmra.mrb[12].mxu0 %vm407_vm3, %v384_v19 }
 0x3ef   :  { %4320 = vmatpush3.msra.mxu0 %v5252_v35  ;;  %4321 = vmatprep.mubr.msk.f32.mxu0 %vm4940_vm2, %v4939_v60 }
 0x3f0   :  { %4329 = vmatprep.subr.mxu0 %v4939_v60 }
 0x44b   :  { %v478_v38 = vpop.f32.mrb[2].mxu0 }
 0x44c   :  { %v479_v39 = vadd.f32 %v478_v38, %v5265_v36  ;;  %v4278_v40 = vpop.f32.mrb[3].mxu0 }
 0x44e   :  { %v1015_v41 = vsel %vm1014_vm4, %v479_v39, -inf }
 0x44f   :  { %1016 = vmax.xlane.f32.xlu0 %v1015_v41 }
 0x452   :  { %v554_v43 = vpop.f32.mrb[4].mxu0 }
 0x453   :  { %v555_v44 = vadd.f32 %v554_v43, %v5272_v42  ;;  %v4283_v45 = vpop.f32.mrb[5].mxu0 }
 0x455   :  { %v1018_v46 = vsel %vm1014_vm4, %v555_v44, -inf }
 0x456   :  { %1019 = vmax.xlane.f32.xlu1 %v1018_v46 }
 0x4b5   :  { %v630_v48 = vpop.f32.mrb[6].mxu0 }
 0x4b6   :  { %v631_v49 = vadd.f32 %v630_v48, %v5279_v47  ;;  %v4288_v50 = vpop.f32.mrb[7].mxu0 }
 0x4b8   :  { %v1021_v52 = vsel %vm1014_vm4, %v631_v49, -inf }
 0x4b9   :  { %1022 = vmax.xlane.f32.xlu0 %v1021_v52  ;;  %v706_v53 = vpop.f32.mrb[8].mxu0  ;;  %v782_v55 = vpop.f32.mrb[4].mxu1 }
 0x4ba   :  { %v707_v57 = vadd.f32 %v706_v53, %v5285_v51  ;;  %v4293_v58 = vpop.f32.mrb[9].mxu0  ;;  %v4298_v61 = vpop.f32.mrb[5].mxu1  ;;  %v783_v63 = vadd.f32 %v782_v55, %v5291_v54 }
 0x4bc   :  { %v1024_v2 = vsel %vm1014_vm4, %v707_v57, -inf  ;;  %v1027_v13 = vsel %vm1014_vm4, %v783_v63, -inf }
 0x4bd   :  { %1025 = vmax.xlane.f32.xlu0 %v1024_v2  ;;  %v858_v3 = vpop.f32.mrb[10].mxu0  ;;  %v934_v5 = vpop.f32.mrb[6].mxu1 }
 0x4be   :  { %v859_v7 = vadd.f32 %v858_v3, %v5297_v62  ;;  %v4303_v8 = vpop.f32.mrb[11].mxu0  ;;  %v4308_v9 = vpop.f32.mrb[7].mxu1  ;;  %v935_v11 = vadd.f32 %v934_v5, %v5304_v4 }
 0x4c0   :  { %v1030_v12 = vsel %vm1014_vm4, %v859_v7, -inf  ;;  %v1033_v18 = vsel %vm1014_vm4, %v935_v11, -inf }
 0x4c1   :  { %1031 = vmax.xlane.f32.xlu1 %v1030_v12  ;;  %v1010_v14 = vpop.f32.mrb[12].mxu0  ;;  %1028 = vmax.xlane.f32.xlu0 %v1027_v13 }
 0x4c2   :  { %v1011_v15 = vadd.f32 %v1010_v14, %v5310_v10  ;;  %v4313_v16 = vpop.f32.mrb[13].mxu0 }
 0x4c4   :  { %v1036_v17 = vsel %vm1014_vm4, %v1011_v15, -inf }
 0x4c5   :  { %1037 = vmax.xlane.f32.xlu1 %v1036_v17  ;;  %1034 = vmax.xlane.f32.xlu0 %v1033_v18 }
 0x4d6   :  { %389 = vrot.lane.b32.xlu1 %v5252_v35, %s4942_s3 }
 0x4da   :  { %393 = vrot.lane.b32.xlu1 %v5239_v31, %s4941_s27 }
 0x4db   :  { %387 = vrot.lane.b32.xlu0 %v5239_v31, %s4942_s3 }
 0x4dc   :  { %v1017_v19 = vpop.xlane.xlu0 %1016 }
 0x4dd   :  { %v1039_v20 = vsub.f32 %v479_v39, %v1017_v19 }
 0x4de   :  { %395 = vrot.lane.b32.xlu1 %v5252_v35, %s4941_s27 }
 0x4df   :  { %v1047_v21 = vmul.f32 1.442695, %v1039_v20 }
 0x4e1   :  { %4825 = vpow2.f32 %v1047_v21 }
 0x4e3   :  { %v1020_v22 = vpop.xlane.xlu1 %1019 }
 0x4e4   :  { %v1040_v24 = vsub.f32 %v555_v44, %v1020_v22 }
 0x4e6   :  { %v1049_v25 = vmul.f32 1.442695, %v1040_v24 }
 0x4e8   :  { %4827 = vpow2.f32 %v1049_v25 }
 0x4eb   :  { %v4826_v29 = vpop.eup %4825 }
 0x4ec   :  { %v1063_v30 = vsel %vm1014_vm4, %v4826_v29, 0.0 }
 0x4f2   :  { %v4828_v32 = vpop.eup %4827 }
 0x4f3   :  { %v1066_v38 = vsel %vm1014_vm4, %v4828_v32, 0.0 }
 0x4fa   :  { %1064 = vadd.xlane.f32.xlu0 %v1063_v30 }
 0x502   :  { %1067 = vadd.xlane.f32.xlu1 %v1066_v38 }
 0x546   :  { %v1023_v40 = vpop.xlane.xlu0 %1022 }
 0x547   :  { %v1041_v41 = vsub.f32 %v631_v49, %v1023_v40 }
 0x549   :  { %v1051_v43 = vmul.f32 1.442695, %v1041_v41 }
 0x54a   :  { %v1026_v45 = vpop.xlane.xlu0 %1025 }
 0x54b   :  { %4829 = vpow2.f32 %v1051_v43  ;;  %v1042_v39 = vsub.f32 %v707_v57, %v1026_v45 }
 0x54d   :  { %v1053_v46 = vmul.f32 1.442695, %v1042_v39 }
 0x54e   :  { %v1032_v48 = vpop.xlane.xlu1 %1031  ;;  %v1029_v50 = vpop.xlane.xlu0 %1028 }
 0x54f   :  { %4831 = vpow2.f32 %v1053_v46  ;;  %v1044_v44 = vsub.f32 %v859_v7, %v1032_v48  ;;  %v1043_v52 = vsub.f32 %v783_v63, %v1029_v50 }
 0x551   :  { %v1057_v53 = vmul.f32 1.442695, %v1044_v44  ;;  %v1055_v55 = vmul.f32 1.442695, %v1043_v52 }
 0x552   :  { %v1038_v58 = vpop.xlane.xlu1 %1037  ;;  %v1035_v61 = vpop.xlane.xlu0 %1034 }
 0x553   :  { %4833 = vpow2.f32 %v1057_v53  ;;  %v1046_v2 = vsub.f32 %v1011_v15, %v1038_v58  ;;  %v1045_v3 = vsub.f32 %v935_v11, %v1035_v61 }
 0x554   :  { %4835 = vpow2.f32 %v1055_v55 }
 0x555   :  { %v4830_v5 = vpop.eup %4829  ;;  %v1061_v49 = vmul.f32 1.442695, %v1046_v2  ;;  %v1059_v8 = vmul.f32 1.442695, %v1045_v3 }
 0x556   :  { %v1069_v9 = vsel %vm1014_vm4, %v4830_v5, 0.0  ;;  %v390_v18 = vpop.permute.xlu1 %389  ;;  %v388_v19 = vpop.permute.xlu0 %387 }
 0x557   :  { %4837 = vpow2.f32 %v1061_v49  ;;  %1070 = vadd.xlane.f32.xlu0 %v1069_v9  ;;  %v237_v49 = vld [vmem:[%s5923_s8] sm:$0xff] }
 0x558   :  { %4839 = vpow2.f32 %v1059_v8  ;;  %v238_v8 = vld [vmem:[%s5923_s8 + $0x8] sm:$0xff] }
 0x559   :  { %v4832_v57 = vpop.eup %4831  ;;  %v5376_v9 = vpack.c.bf16 %v238_v8, %v237_v49 }
 0x55a   :  { %v1072_v7 = vsel %vm1014_vm4, %v4832_v57, 0.0  ;;  %v394_v20 = vpop.permute.xlu1 %393 }
 0x55b   :  { %1073 = vadd.xlane.f32.xlu1 %v1072_v7 }
 0x55d   :  { %v4834_v63 = vpop.eup %4833 }
 0x55e   :  { %v4836_v12 = vpop.eup %4835  ;;  %v1078_v13 = vsel %vm1014_vm4, %v4834_v63, 0.0  ;;  %v396_v22 = vpop.permute.xlu1 %395 }
 0x55f   :  { %1079 = vadd.xlane.f32.xlu1 %v1078_v13  ;;  %v1075_v11 = vsel %vm1014_vm4, %v4836_v12, 0.0  ;;  %v239_v13 = vld [vmem:[%s5923_s8 + $0x10] sm:$0xff] }
 0x560   :  { %1076 = vadd.xlane.f32.xlu0 %v1075_v11  ;;  %v240_v11 = vld [vmem:[%s5923_s8 + $0x18] sm:$0xff] }
 0x561   :  { %v5332_v14 = vpop.eup %4837 }
 0x562   :  { %v5334_v15 = vpop.eup %4839  ;;  %v1084_v16 = vsel %vm1014_vm4, %v5332_v14, 0.0 }
 0x563   :  { %1085 = vadd.xlane.f32.xlu1 %v1084_v16  ;;  %v1081_v17 = vsel %vm1014_vm4, %v5334_v15, 0.0  ;;  %v242_v16 = vld [vmem:[%s5923_s8 + $0x28] sm:$0xff] }
 0x564   :  { %1082 = vadd.xlane.f32.xlu0 %v1081_v17 }
 0x574   :  { %401 = vrot.lane.b32.xlu1 %v5252_v35, %s4943_s7 }
 0x57a   :  { %399 = vrot.lane.b32.xlu0 %v5239_v31, %s4943_s7 }
 0x587   :  { %v1065_v21 = vpop.xlane.xlu0 %1064 }
 0x588   :  { %4841 = vrcp.f32 %v1065_v21 }
 0x58f   :  { %v1068_v24 = vpop.xlane.xlu1 %1067 }
 0x590   :  { %4843 = vrcp.f32 %v1068_v24 }
 0x592   :  { %v4842_v25 = vpop.eup %4841 }
 0x593   :  { %v1095_v30 = vmul.f32 %v4842_v25, %v4826_v29 }
 0x595   :  { %4317 = vmatmul.mubr.msk.f32.vlgmr.msra.gmra.mrb[8].mxu1 %vm1014_vm4, %v1095_v30 }
 0x596   :  { %4325 = vmatpush3.msra.mxu1 %v388_v19  ;;  %4326 = vmatprep.mubr.msk.f32.mxu1 %vm4940_vm2, %v4939_v60  ;;  %v244_v19 = vld [vmem:[%s5923_s8 + $0x38] sm:$0xff] }
 0x597   :  { %4334 = vmatprep.subr.mxu1 %v4939_v60 }
 0x59a   :  { %v4844_v35 = vpop.eup %4843 }
 0x59b   :  { %v1096_v31 = vmul.f32 %v4844_v35, %v4828_v32 }
 0x59d   :  { %4322 = vmatmul.mubr.msk.f32.vlgmr.msra.gmra.mrb[14].mxu0 %vm1014_vm4, %v1096_v31 }
 0x59e   :  { %4330 = vmatpush3.msra.mxu0 %v390_v18  ;;  %4331 = vmatprep.mubr.msk.f32.mxu0 %vm4940_vm2, %v4939_v60  ;;  %v243_v18 = vld [vmem:[%s5923_s8 + $0x30] sm:$0xff] }
 0x59f   :  { %4339 = vmatprep.subr.mxu0 %v4939_v60 }
 0x5e4   :  { %v1071_v38 = vpop.xlane.xlu0 %1070 }
 0x5e5   :  { %4845 = vrcp.f32 %v1071_v38 }
 0x5e8   :  { %v1074_v29 = vpop.xlane.xlu1 %1073 }
 0x5e9   :  { %4847 = vrcp.f32 %v1074_v29 }
 0x5ec   :  { %v1080_v40 = vpop.xlane.xlu1 %1079 }
 0x5ed   :  { %4849 = vrcp.f32 %v1080_v40  ;;  %v1077_v41 = vpop.xlane.xlu0 %1076 }
 0x5ee   :  { %4851 = vrcp.f32 %v1077_v41 }
 0x5ef   :  { %v4846_v43 = vpop.eup %4845 }
 0x5f0   :  { %v1097_v45 = vmul.f32 %v4846_v43, %v4830_v5  ;;  %v1086_v39 = vpop.xlane.xlu1 %1085 }
 0x5f1   :  { %4853 = vrcp.f32 %v1086_v39  ;;  %v1083_v32 = vpop.xlane.xlu0 %1082 }
 0x5f2   :  { %4855 = vrcp.f32 %v1083_v32  ;;  %4327 = vmatmul.mubr.msk.f32.vlgmr.msra.gmra.mrb[10].mxu1 %vm1014_vm4, %v1097_v45 }
 0x5f3   :  { %v4848_v46 = vpop.eup %4847  ;;  %4335 = vmatpush3.msra.mxu1 %v394_v20  ;;  %4336 = vmatprep.mubr.msk.f32.mxu1 %vm4940_vm2, %v4939_v60  ;;  %v5406_v20 = vpack.c.bf16 %v244_v19, %v243_v18 }
 0x5f4   :  { %v1098_v48 = vmul.f32 %v4848_v46, %v4832_v57  ;;  %4344 = vmatprep.subr.mxu1 %v4939_v60  ;;  %v402_v55 = vpop.permute.xlu1 %401 }
 0x5f5   :  { %v400_v61 = vpop.permute.xlu0 %399 }
 0x5f6   :  { %4332 = vmatmul.mubr.msk.f32.vlgmr.msra.gmra.mrb[16].mxu0 %vm1014_vm4, %v1098_v48 }
 0x5f7   :  { %v4850_v50 = vpop.eup %4849  ;;  %4340 = vmatpush3.msra.mxu0 %v396_v22  ;;  %4341 = vmatprep.mubr.msk.f32.mxu0 %vm4940_vm2, %v4939_v60 }
 0x5f8   :  { %v4852_v44 = vpop.eup %4851  ;;  %v1100_v52 = vmul.f32 %v4850_v50, %v4834_v63  ;;  %4349 = vmatprep.subr.mxu0 %v4939_v60 }
 0x5f9   :  { %v1099_v53 = vmul.f32 %v4852_v44, %v4836_v12 }
 0x5fa   :  { %4342 = vmatmul.mubr.msk.f32.vlgmr.msra.gmra.mrb[18].mxu0 %vm1014_vm4, %v1100_v52 }
 0x5fb   :  { %v4854_v58 = vpop.eup %4853  ;;  %4337 = vmatmul.mubr.msk.f32.vlgmr.msra.gmra.mrb[12].mxu1 %vm1014_vm4, %v1099_v53  ;;  %4350 = vmatpush3.msra.mxu0 %v402_v55 }
 0x5fc   :  { %v4856_v2 = vpop.eup %4855  ;;  %v1102_v3 = vmul.f32 %v4854_v58, %v5332_v14  ;;  %4345 = vmatpush3.msra.mxu1 %v400_v61  ;;  %4346 = vmatprep.mubr.msk.f32.mxu1 %vm4940_vm2, %v4939_v60  ;;  %v5386_v14 = vpack.c.bf16 %v240_v11, %v239_v13 }
 0x5fd   :  { %v1101_v5 = vmul.f32 %v4856_v2, %v5334_v15  ;;  %4351 = vmatprep.mubr.msk.f32.mxu0 %vm4940_vm2, %v4939_v60  ;;  %4643 = vmatprep.subr.bf16.mxu1 %v5376_v9  ;;  %v241_v15 = vld [vmem:[%s5923_s8 + $0x20] sm:$0xff]  ;;  %s4947_s8 = smov 48  }
 0x5fe   :  { %4352 = vmatmul.mubr.msk.f32.vlgmr.msra.gmra.mrb[20].mxu0 %vm1014_vm4, %v1102_v3  ;;  %v5396_v17 = vpack.c.bf16 %v242_v16, %v241_v15  ;;  %v5427_v2 = vld [vmem:[%s5924_s9] ss:$0 sm:$0xff] }
 0x5ff   :  { %4347 = vmatmul.mubr.msk.f32.vlgmr.msra.gmra.mrb[14].mxu1 %vm1014_vm4, %v1101_v5 }
 0x600   :  { %4645 = vmatpush3.bf16.msra.mxu1 %v5376_v9 }
 0x601   :  { %4647 = vmatprep.subr.bf16.mxu1 %v5386_v14 }
 0x604   :  { %4649 = vmatpush3.bf16.msra.mxu1 %v5386_v14 }
 0x605   :  { %4651 = vmatprep.subr.bf16.mxu1 %v5396_v17 }
 0x608   :  { %4653 = vmatpush3.bf16.msra.mxu1 %v5396_v17 }
 0x609   :  { %4655 = vmatprep.subr.bf16.mxu1 %v5406_v20 }
 0x60c   :  { %4657 = vmatpush3.bf16.msra.mxu1 %v5406_v20 }
 0x668   :  { %v1172_v57 = vpop.f32.mrb[8].mxu1 }
 0x669   :  { %v4318_v7 = vpop.f32.mrb[9].mxu1 }
 0x670   :  { %v1245_v63 = vpop.f32.mrb[14].mxu0 }
 0x671   :  { %v4323_v12 = vpop.f32.mrb[15].mxu0 }
 0x6c5   :  { %v1318_v21 = vpop.f32.mrb[10].mxu1 }
 0x6c6   :  { %1689 = vrot.lane.b32.xlu0 %v1318_v21, %s4945_s26  ;;  %v4328_v22 = vpop.f32.mrb[11].mxu1 }
 0x6c9   :  { %v1391_v24 = vpop.f32.mrb[16].mxu0 }
 0x6ca   :  { %1691 = vrot.lane.b32.xlu1 %v1391_v24, %s4945_s26  ;;  %v4333_v25 = vpop.f32.mrb[17].mxu0 }
 0x6cb   :  { %v249_v25 = vld [vmem:[%s5927_s12 + $0x8] sm:$0xff] }
 0x6cd   :  { %v1537_v30 = vpop.f32.mrb[18].mxu0 }
 0x6ce   :  { %v1464_v35 = vpop.f32.mrb[12].mxu1  ;;  %1699 = vrot.lane.b32.xlu1 %v1537_v30, %s4946_s28  ;;  %v4343_v31 = vpop.f32.mrb[19].mxu0 }
 0x6cf   :  { %1697 = vrot.lane.b32.xlu0 %v1464_v35, %s4946_s28  ;;  %v4338_v38 = vpop.f32.mrb[13].mxu1  ;;  %v250_v35 = vld [vmem:[%s5927_s12 + $0x10] sm:$0xff]  ;;  %v251_v31 = vld [vmem:[%s5927_s12 + $0x18] sm:$0xff] }
 0x6d0   :  { %v5453_v38 = vpack.c.bf16 %v251_v31, %v250_v35  ;;  %v272_v35 = vld [vmem:[%s5929_s14 + $0x78] sm:$0xff] }
 0x6d1   :  { %v1683_v29 = vpop.f32.mrb[20].mxu0 }
 0x6d2   :  { %v1610_v40 = vpop.f32.mrb[14].mxu1  ;;  %1707 = vrot.lane.b32.xlu1 %v1683_v29, %s4947_s8  ;;  %v4353_v41 = vpop.f32.mrb[21].mxu0  ;;  %v252_v29 = vld [vmem:[%s5927_s12 + $0x20] sm:$0xff] }
 0x6d3   :  { %1705 = vrot.lane.b32.xlu0 %v1610_v40, %s4947_s8  ;;  %v4348_v43 = vpop.f32.mrb[15].mxu1  ;;  %v253_v40 = vld [vmem:[%s5927_s12 + $0x28] sm:$0xff] }
 0x6d4   :  { %v5463_v41 = vpack.c.bf16 %v253_v40, %v252_v29  ;;  %v254_v43 = vld [vmem:[%s5927_s12 + $0x30] sm:$0xff]  ;;  %v5593_v29 = vld [vmem:[%s5928_s13] ss:$0 sm:$0xff] }
 0x738   :  { %v1690_v39 = vpop.permute.xlu0 %1689 }
 0x739   :  { %v1711_v50 = vsel %vm407_vm3, %v1172_v57, %v1690_v39 }
 0x73c   :  { %v1692_v45 = vpop.permute.xlu1 %1691 }
 0x73d   :  { %v1712_v48 = vsel %vm407_vm3, %v1245_v63, %v1692_v45  ;;  %v255_v45 = vld [vmem:[%s5927_s12 + $0x38] sm:$0xff] }
 0x73e   :  { %v5473_v39 = vpack.c.bf16 %v255_v45, %v254_v43 }
 0x740   :  { %v1700_v32 = vpop.permute.xlu1 %1699 }
 0x741   :  { %v1698_v46 = vpop.permute.xlu0 %1697  ;;  %v1714_v44 = vsel %vm76_vm0, %v1712_v48, %v1700_v32  ;;  %v257_v32 = vld [vmem:[%s5929_s14] sm:$0xff] }
 0x742   :  { %v1713_v53 = vsel %vm76_vm0, %v1711_v50, %v1698_v46  ;;  %v258_v46 = vld [vmem:[%s5929_s14 + $0x8] sm:$0xff] }
 0x743   :  { %v5484_v48 = vpack.c.bf16 %v258_v46, %v257_v32 }
 0x744   :  { %v1708_v52 = vpop.permute.xlu1 %1707 }
 0x745   :  { %v1717_v55 = vsel %vm1715_vm5, %v1714_v44, %v1708_v52  ;;  %v1706_v58 = vpop.permute.xlu0 %1705  ;;  %4675 = vmatprep.subr.bf16.mxu1 %v5484_v48 }
 0x746   :  { %v1716_v61 = vsel %vm1715_vm5, %v1713_v53, %v1706_v58 }
 0x747   :  { %4370 = vmatprep.mubr.msk.f32.mxu1 %vm287_vm1, %v1716_v61  ;;  %v5491_v61 = vld [vmem:[%s5925_s10] ss:$0 sm:$0xff] }
 0x748   :  { %4371 = vmatmul.mubr.msk.f32.vlgmr.msra.gmra.mrb[16].mxu1 %vm287_vm1, %v1717_v55 }
 0x749   :  { %4677 = vmatpush3.bf16.msra.mxu1 %v5484_v48 }
 0x81b   :  { %v4372_v3 = vpop.f32.mrb[16].mxu1 }
 0x81c   :  { %v1802_v5 = vadd.f32 %v4372_v3, %v5427_v2  ;;  %v1796_v49 = vpop.f32.mrb[17].mxu1 }
 0x81d   :  { %v1797_v8 = vadd.f32 %v5427_v2, %v1796_v49 }
 0x81e   :  { %v1806_v57 = vadd.f32 %v1802_v5, %v5178_v1  ;;  %v5496_v5 = vld [vmem:[%s5926_s11] ss:$0 sm:$0xff] }
 0x81f   :  { %v1805_v7 = vadd.f32 %v1797_v8, %v5173_v0  ;;  %v248_v0 = vld [vmem:[%s5927_s12] sm:$0xff] }
 0x820   :  { %v1810_v63 = vsel %vm287_vm1, %v1806_v57, 0.0  ;;  %v5443_v30 = vpack.c.bf16 %v249_v25, %v248_v0  ;;  %v271_v25 = vld [vmem:[%s5929_s14 + $0x70] sm:$0xff] }
 0x821   :  { %1811 = vadd.xlane.f32.xlu1 %v1810_v63  ;;  %v1807_v12 = vsel %vm287_vm1, %v1805_v7, 0.0  ;;  %v5584_v31 = vpack.c.bf16 %v272_v35, %v271_v25 }
 0x822   :  { %1808 = vadd.xlane.f32.xlu0 %v1807_v12  ;;  %4659 = vmatprep.subr.bf16.mxu0 %v5443_v30 }
 0x823   :  { %4661 = vmatpush3.bf16.msra.mxu0 %v5443_v30 }
 0x824   :  { %4663 = vmatprep.subr.bf16.mxu0 %v5453_v38 }
 0x827   :  { %4665 = vmatpush3.bf16.msra.mxu0 %v5453_v38 }
 0x828   :  { %4667 = vmatprep.subr.bf16.mxu0 %v5463_v41 }
 0x82b   :  { %4669 = vmatpush3.bf16.msra.mxu0 %v5463_v41 }
 0x82c   :  { %4671 = vmatprep.subr.bf16.mxu0 %v5473_v39 }
 0x82f   :  { %4673 = vmatpush3.bf16.msra.mxu0 %v5473_v39 }
 0x830   :  { %4707 = vmatprep.subr.bf16.mxu0 %v5096_v23 }
 0x8ae   :  { %v1812_v13 = vpop.xlane.xlu1 %1811 }
 0x8af   :  { %v1815_v11 = vmul.f32 0.015625, %v1812_v13  ;;  %v1809_v15 = vpop.xlane.xlu0 %1808 }
 0x8b0   :  { %v1814_v16 = vmul.f32 0.015625, %v1809_v15  ;;  %v265_v15 = vld [vmem:[%s5929_s14 + $0x40] sm:$0xff] }
 0x8b1   :  { %v1817_v18 = vsub.f32 %v1806_v57, %v1815_v11 }
 0x8b2   :  { %v1816_v19 = vsub.f32 %v1805_v7, %v1814_v16  ;;  %v266_v16 = vld [vmem:[%s5929_s14 + $0x48] sm:$0xff] }
 0x8b3   :  { %v1819_v24 = vmul.f32 %v1817_v18, %v1817_v18 }
 0x8b4   :  { %v1818_v21 = vmul.f32 %v1816_v19, %v1816_v19 }
 0x8b5   :  { %v1823_v1 = vsel %vm287_vm1, %v1819_v24, 0.0  ;;  %v269_v24 = vld [vmem:[%s5929_s14 + $0x60] sm:$0xff] }
 0x8b6   :  { %v1820_v22 = vsel %vm287_vm1, %v1818_v21, 0.0  ;;  %v268_v21 = vld [vmem:[%s5929_s14 + $0x58] sm:$0xff] }
 0x8b7   :  { %1821 = vadd.xlane.f32.xlu0 %v1820_v22 }
 0x8bb   :  { %1824 = vadd.xlane.f32.xlu0 %v1823_v1  ;;  %v270_v1 = vld [vmem:[%s5929_s14 + $0x68] sm:$0xff] }
 0x8bc   :  { %v5574_v0 = vpack.c.bf16 %v270_v1, %v269_v24 }
 0x944   :  { %v1822_v50 = vpop.xlane.xlu0 %1821 }
 0x945   :  { %v1826_v44 = vmul.f32 0.015625, %v1822_v50 }
 0x947   :  { %v1828_v52 = vadd.f32 1e-12, %v1826_v44 }
 0x948   :  { %v1825_v53 = vpop.xlane.xlu0 %1824 }
 0x949   :  { %4857 = vrsqrt.f32 %v1828_v52  ;;  %v1827_v23 = vmul.f32 0.015625, %v1825_v53 }
 0x94b   :  { %v1829_v55 = vadd.f32 1e-12, %v1827_v23 }
 0x94d   :  { %4859 = vrsqrt.f32 %v1829_v55 }
 0x953   :  { %v4858_v58 = vpop.eup %4857 }
 0x954   :  { %v1832_v3 = vmul.f32 %v4858_v58, %v1816_v19  ;;  %v267_v19 = vld [vmem:[%s5929_s14 + $0x50] sm:$0xff] }
 0x955   :  { %v5564_v22 = vpack.c.bf16 %v268_v21, %v267_v19 }
 0x956   :  { %v1840_v49 = vmul.f32 %v5491_v61, %v1832_v3 }
 0x957   :  { %v4860_v8 = vpop.eup %4859 }
 0x958   :  { %v1833_v57 = vmul.f32 %v4860_v8, %v1817_v18  ;;  %v5500_v7 = vadd.f32 %v5496_v5, %v1840_v49  ;;  %v5553_v18 = vpack.c.bf16 %v266_v16, %v265_v15 }
 0x95a   :  { %4389 = vmatprep.mubr.msk.f32.mxu0 %vm287_vm1, %v5500_v7  ;;  %v1841_v63 = vmul.f32 %v5491_v61, %v1833_v57 }
 0x95c   :  { %v5506_v12 = vadd.f32 %v5496_v5, %v1841_v63 }
 0x95e   :  { %4390 = vmatmul.mubr.msk.f32.vlgmr.msra.gmra.mrb[22].mxu0 %vm287_vm1, %v5506_v12 }
 0x95f   :  { %4709 = vmatpush1.bf16.msra.mxu0 %v5107_v27  ;;  %2150 = vmatprep.mubr.f32.mxu0 %v4939_v60  ;;  %v259_v27 = vld [vmem:[%s5929_s14 + $0x10] sm:$0xff] }
 0x960   :  { %4711 = vmatprep.subr.bf16.mxu0 %v5109_v28  ;;  %v260_v28 = vld [vmem:[%s5929_s14 + $0x18] sm:$0xff] }
 0x961   :  { %v5525_v13 = vpack.c.bf16 %v260_v28, %v259_v27 }
 0x963   :  { %4713 = vmatpush1.bf16.msra.mxu0 %v5125_v33  ;;  %4679 = vmatprep.subr.bf16.mxu1 %v5525_v13  ;;  %v261_v33 = vld [vmem:[%s5929_s14 + $0x20] sm:$0xff] }
 0x964   :  { %4715 = vmatprep.subr.bf16.mxu0 %v5128_v34  ;;  %4681 = vmatpush3.bf16.msra.mxu1 %v5525_v13  ;;  %v262_v34 = vld [vmem:[%s5929_s14 + $0x28] sm:$0xff] }
 0x967   :  { %4717 = vmatpush1.bf16.msra.mxu0 %v5137_v37  ;;  %v5535_v37 = vpack.c.bf16 %v262_v34, %v261_v33 }
 0x968   :  { %4719 = vmatprep.subr.bf16.mxu0 %v5155_v56  ;;  %v263_v56 = vld [vmem:[%s5929_s14 + $0x30] sm:$0xff] }
 0x969   :  { %4683 = vmatprep.subr.bf16.mxu1 %v5535_v37 }
 0x96a   :  { %4685 = vmatpush3.bf16.msra.mxu1 %v5535_v37 }
 0x96b   :  { %4721 = vmatpush1.bf16.msra.mxu0 %v5163_v59  ;;  %v264_v59 = vld [vmem:[%s5929_s14 + $0x38] sm:$0xff] }
 0x96c   :  { %4427 = vmatprep.subr.mxu0 %v4939_v60  ;;  %v5545_v11 = vpack.c.bf16 %v264_v59, %v263_v56  ;;  %v5602_v59 = vld [vmem:[%s5930_s15] ss:$0 sm:$0xff] }
 0x96e   :  { %4687 = vmatprep.subr.bf16.mxu1 %v5545_v11 }
 0x96f   :  { %4689 = vmatpush3.bf16.msra.mxu1 %v5545_v11 }
 0x970   :  { %4691 = vmatprep.subr.bf16.mxu1 %v5553_v18 }
 0x973   :  { %4693 = vmatpush3.bf16.msra.mxu1 %v5553_v18 }
 0x974   :  { %4695 = vmatprep.subr.bf16.mxu1 %v5564_v22 }
 0x977   :  { %4697 = vmatpush3.bf16.msra.mxu1 %v5564_v22 }
 0x978   :  { %4699 = vmatprep.subr.bf16.mxu1 %v5574_v0 }
 0x97b   :  { %4701 = vmatpush3.bf16.msra.mxu1 %v5574_v0 }
 0x97c   :  { %4703 = vmatprep.subr.bf16.mxu1 %v5584_v31 }
 0x97f   :  { %4705 = vmatpush3.bf16.msra.mxu1 %v5584_v31 }
 0x980   :  { %4442 = vmatprep.subr.mxu1 %v4939_v60 }
 0xa31   :  { %v4391_v40 = vpop.f32.mrb[22].mxu0 }
 0xa32   :  { %v1934_v43 = vadd.f32 %v4391_v40, %v5593_v29  ;;  %v1928_v45 = vpop.f32.mrb[23].mxu0 }
 0xa33   :  { %v1929_v32 = vadd.f32 %v5593_v29, %v1928_v45 }
 0xa34   :  { %v1940_v46 = vmul.f32 0.044715, %v1934_v43  ;;  %v1938_v33 = vmul.f32 0.5, %v1934_v43 }
 0xa35   :  { %v1939_v50 = vmul.f32 0.044715, %v1929_v32  ;;  %v1937_v27 = vmul.f32 0.5, %v1929_v32 }
 0xa36   :  { %v1942_v44 = vmul.f32 %v1940_v46, %v1934_v43 }
 0xa37   :  { %v1941_v52 = vmul.f32 %v1939_v50, %v1929_v32 }
 0xa38   :  { %v1944_v53 = vmul.f32 %v1942_v44, %v1934_v43 }
 0xa39   :  { %v1943_v23 = vmul.f32 %v1941_v52, %v1929_v32 }
 0xa3a   :  { %v1946_v55 = vadd.f32 %v1944_v53, %v1934_v43 }
 0xa3b   :  { %v1945_v58 = vadd.f32 %v1943_v23, %v1929_v32 }
 0xa3c   :  { %v1948_v3 = vmul.f32 0.7978846, %v1946_v55 }
 0xa3d   :  { %v1947_v49 = vmul.f32 0.7978846, %v1945_v58 }
 0xa3e   :  { %4861 = vtanh.f32 %v1948_v3 }
 0xa3f   :  { %4863 = vtanh.f32 %v1947_v49 }
 0xa48   :  { %v4862_v8 = vpop.eup %4861 }
 0xa49   :  { %v4864_v57 = vpop.eup %4863  ;;  %v1952_v63 = vadd.f32 1.0, %v4862_v8 }
 0xa4a   :  { %v1951_v28 = vadd.f32 1.0, %v4864_v57 }
 0xa4b   :  { %v1954_v56 = vmul.f32 %v1952_v63, %v1938_v33  ;;  %v5615_v63 = vld [vmem:[%s5931_s16] ss:$0 sm:$0xff] }
 0xa4c   :  { %v1953_v34 = vmul.f32 %v1951_v28, %v1937_v27  ;;  %v5620_v33 = vld [vmem:[%s5932_s17] ss:$0 sm:$0xff] }
 0xa4e   :  { %4424 = vmatprep.mubr.f32.mxu1 %v1953_v34 }
 0xa4f   :  { %4425 = vmatmul.mubr.f32.vlgmr.msra.gmra.mrb[18].mxu1 %v1954_v56 }
 0xa50   :  { %4444 = vmatprep.mubr.msk.f32.mxu1 %vm4940_vm2, %v4939_v60 }
 0xb22   :  { %v4426_v15 = vpop.f32.mrb[18].mxu1 }
 0xb23   :  { %v2033_v16 = vadd.f32 %v4426_v15, %v5602_v59  ;;  %v2027_v19 = vpop.f32.mrb[19].mxu1 }
 0xb24   :  { %v2028_v21 = vadd.f32 %v5602_v59, %v2027_v19 }
 0xb25   :  { %v2037_v24 = vadd.f32 %v2033_v16, %v5506_v12 }
 0xb26   :  { %v2036_v1 = vadd.f32 %v2028_v21, %v5500_v7 }
 0xb27   :  { %v2041_v25 = vsel %vm287_vm1, %v2037_v24, 0.0 }
 0xb28   :  { %2042 = vadd.xlane.f32.xlu1 %v2041_v25  ;;  %v2038_v35 = vsel %vm287_vm1, %v2036_v1, 0.0 }
 0xb29   :  { %2039 = vadd.xlane.f32.xlu0 %v2038_v35 }
 0xbb5   :  { %v2043_v40 = vpop.xlane.xlu1 %2042 }
 0xbb6   :  { %v2045_v43 = vmul.f32 0.015625, %v2043_v40  ;;  %v2040_v45 = vpop.xlane.xlu0 %2039 }
 0xbb7   :  { %v2044_v32 = vmul.f32 0.015625, %v2040_v45 }
 0xbb8   :  { %v2047_v46 = vsub.f32 %v2037_v24, %v2045_v43 }
 0xbb9   :  { %v2046_v50 = vsub.f32 %v2036_v1, %v2044_v32 }
 0xbba   :  { %v2049_v44 = vmul.f32 %v2047_v46, %v2047_v46 }
 0xbbb   :  { %v2048_v52 = vmul.f32 %v2046_v50, %v2046_v50 }
 0xbbc   :  { %v2053_v53 = vsel %vm287_vm1, %v2049_v44, 0.0 }
 0xbbd   :  { %2054 = vadd.xlane.f32.xlu1 %v2053_v53  ;;  %v2050_v12 = vsel %vm287_vm1, %v2048_v52, 0.0 }
 0xbbe   :  { %2051 = vadd.xlane.f32.xlu0 %v2050_v12 }
 0xc4a   :  { %v2055_v7 = vpop.xlane.xlu1 %2054 }
 0xc4b   :  { %v2057_v23 = vmul.f32 0.015625, %v2055_v7  ;;  %v2052_v55 = vpop.xlane.xlu0 %2051 }
 0xc4c   :  { %v2056_v58 = vmul.f32 0.015625, %v2052_v55 }
 0xc4d   :  { %v2059_v3 = vadd.f32 1e-12, %v2057_v23 }
 0xc4e   :  { %v2058_v49 = vadd.f32 1e-12, %v2056_v58 }
 0xc4f   :  { %4865 = vrsqrt.f32 %v2059_v3 }
 0xc50   :  { %4867 = vrsqrt.f32 %v2058_v49 }
 0xc59   :  { %v4866_v8 = vpop.eup %4865 }
 0xc5a   :  { %v4868_v57 = vpop.eup %4867  ;;  %v2063_v28 = vmul.f32 %v4866_v8, %v2047_v46 }
 0xc5b   :  { %v2062_v27 = vmul.f32 %v4868_v57, %v2046_v50 }
 0xc5c   :  { %v2071_v15 = vmul.f32 %v5615_v63, %v2063_v28 }
 0xc5d   :  { %v2070_v34 = vmul.f32 %v5615_v63, %v2062_v27 }
 0xc5e   :  { %v5631_v16 = vadd.f32 %v5620_v33, %v2071_v15 }
 0xc5f   :  { %v5624_v56 = vadd.f32 %v5620_v33, %v2070_v34 }
 0xc61   :  { %4065 = vmatmul.mubr.msk.f32.vlgmr.msra.gmra.mrb[24].mxu0 %vm287_vm1, %v5624_v56 }
 0xc62   :  { %2156 = vmatprep.mubr.f32.mxu0 %v4939_v60 }
 0xc65   :  { %4066 = vmatmul.mubr.msk.f32.gmra.mrb[26].mxu0 %vm287_vm1, %v5631_v16 }
 0xc66   :  { %4429 = vmatprep.mubr.msk.f32.mxu0 %vm4940_vm2, %v4939_v60 }
 0xd34   :  { %v2152_v19 = vpop.f32.mrb[24].mxu0 }
 0xd35   :  { %v2153_v21 = vadd.f32 %v2152_v19, %v5185_v6  ;;  %v2154_v24 = vpop.f32.mrb[25].mxu0 }
 0xd36   :  { %v5681_v55 = vadd.f32 %v2154_v24, %v5227_v26 }
 0xd37   :  { %2169 = vrot.lane.b32.xlu1 %v2153_v21, %s4941_s27  ;;  %2165 = vrot.lane.b32.xlu0 %v2153_v21, %s4942_s3 }
 0xd38   :  { %v2158_v1 = vpop.f32.mrb[26].mxu0 }
 0xd39   :  { %v2159_v25 = vadd.f32 %v2158_v1, %v5185_v6  ;;  %v2160_v35 = vpop.f32.mrb[27].mxu0 }
 0xd3a   :  { %v5693_v3 = vadd.f32 %v2160_v35, %v5227_v26 }
 0xd3b   :  { %2167 = vrot.lane.b32.xlu1 %v2159_v25, %s4942_s3  ;;  %2173 = vrot.lane.b32.xlu0 %v2153_v21, %s4943_s7 }
 0xd3f   :  { %2171 = vrot.lane.b32.xlu1 %v2159_v25, %s4941_s27  ;;  %2197 = vrot.lane.b32.xlu0 %v2153_v21, %s4944_s29 }
 0xd43   :  { %2175 = vrot.lane.b32.xlu1 %v2159_v25, %s4943_s7 }
 0xd47   :  { %2273 = vrot.lane.b32.xlu1 %v2159_v25, %s4944_s29 }
 0xda9   :  { %v2170_v40 = vpop.permute.xlu1 %2169  ;;  %v2166_v43 = vpop.permute.xlu0 %2165 }
 0xdaa   :  { %2349 = vrot.lane.b32.xlu0 %v2166_v43, %s4944_s29 }
 0xdad   :  { %v2168_v45 = vpop.permute.xlu1 %2167  ;;  %v2174_v32 = vpop.permute.xlu0 %2173 }
 0xdae   :  { %2425 = vrot.lane.b32.xlu1 %v2168_v45, %s4944_s29  ;;  %2501 = vrot.lane.b32.xlu0 %v2170_v40, %s4944_s29 }
 0xdb1   :  { %v2172_v6 = vpop.permute.xlu1 %2171  ;;  %v2198_v46 = vpop.permute.xlu0 %2197 }
 0xdb2   :  { %2577 = vrot.lane.b32.xlu1 %v2172_v6, %s4944_s29  ;;  %2653 = vrot.lane.b32.xlu0 %v2174_v32, %s4944_s29 }
 0xdb3   :  { %4428 = vmatpush3.xpose.msk.msra.mxu0 %vm407_vm3, %v2198_v46 }
 0xdb4   :  { %4432 = vmatprep.subr.mxu0 %v4939_v60 }
 0xdb5   :  { %v2176_v50 = vpop.permute.xlu1 %2175 }
 0xdb6   :  { %4430 = vmatmul.mubr.msk.f32.vlgmr.msra.gmra.mrb[28].mxu0 %vm407_vm3, %v2153_v21  ;;  %2729 = vrot.lane.b32.xlu1 %v2176_v50, %s4944_s29 }
 0xdb7   :  { %4434 = vmatprep.mubr.msk.f32.mxu0 %vm4940_vm2, %v4939_v60 }
 0xdb9   :  { %v2274_v44 = vpop.permute.xlu1 %2273 }
 0xdba   :  { %4433 = vmatpush3.xpose.msk.msra.mxu0 %vm407_vm3, %v2274_v44 }
 0xdbb   :  { %4437 = vmatprep.subr.mxu0 %v4939_v60 }
 0xdbd   :  { %4435 = vmatmul.mubr.msk.f32.vlgmr.msra.gmra.mrb[30].mxu0 %vm407_vm3, %v2159_v25 }
 0xdbe   :  { %4439 = vmatprep.mubr.msk.f32.mxu0 %vm4940_vm2, %v4939_v60 }
 0xe1c   :  { %v2350_v52 = vpop.permute.xlu0 %2349 }
 0xe1d   :  { %4438 = vmatpush3.xpose.msk.msra.mxu0 %vm407_vm3, %v2350_v52 }
 0xe1e   :  { %4447 = vmatprep.subr.mxu0 %v4939_v60 }
 0xe20   :  { %v2426_v53 = vpop.permute.xlu1 %2425  ;;  %4440 = vmatmul.mubr.msk.f32.vlgmr.msra.gmra.mrb[32].mxu0 %vm407_vm3, %v2166_v43  ;;  %v2502_v12 = vpop.permute.xlu0 %2501 }
 0xe21   :  { %4443 = vmatpush3.xpose.msk.msra.mxu1 %vm407_vm3, %v2426_v53  ;;  %4448 = vmatpush3.xpose.msk.msra.mxu0 %vm407_vm3, %v2502_v12 }
 0xe22   :  { %4449 = vmatprep.mubr.msk.f32.mxu0 %vm4940_vm2, %v4939_v60  ;;  %4452 = vmatprep.subr.mxu1 %v4939_v60 }
 0xe23   :  { %4457 = vmatprep.subr.mxu0 %v4939_v60 }
 0xe24   :  { %4445 = vmatmul.mubr.msk.f32.vlgmr.msra.gmra.mrb[20].mxu1 %vm407_vm3, %v2168_v45  ;;  %v2578_v7 = vpop.permute.xlu1 %2577  ;;  %4450 = vmatmul.mubr.msk.f32.vlgmr.msra.gmra.mrb[34].mxu0 %vm407_vm3, %v2170_v40  ;;  %v2654_v23 = vpop.permute.xlu0 %2653 }
 0xe25   :  { %4453 = vmatpush3.xpose.msk.msra.mxu1 %vm407_vm3, %v2578_v7  ;;  %4458 = vmatpush3.xpose.msk.msra.mxu0 %vm407_vm3, %v2654_v23 }
 0xe26   :  { %4454 = vmatprep.mubr.msk.f32.mxu1 %vm4940_vm2, %v4939_v60  ;;  %4459 = vmatprep.mubr.msk.f32.mxu0 %vm4940_vm2, %v4939_v60 }
 0xe27   :  { %4462 = vmatprep.subr.mxu1 %v4939_v60  ;;  %4467 = vmatprep.subr.mxu0 %v4939_v60 }
 0xe28   :  { %4455 = vmatmul.mubr.msk.f32.vlgmr.msra.gmra.mrb[22].mxu1 %vm407_vm3, %v2172_v6  ;;  %v2730_v58 = vpop.permute.xlu1 %2729  ;;  %4460 = vmatmul.mubr.msk.f32.vlgmr.msra.gmra.mrb[36].mxu0 %vm407_vm3, %v2174_v32 }
 0xe29   :  { %4463 = vmatpush3.xpose.msk.msra.mxu1 %vm407_vm3, %v2730_v58  ;;  %4468 = vmatpush3.msra.mxu0 %v5681_v55 }
 0xe2a   :  { %4464 = vmatprep.mubr.msk.f32.mxu1 %vm4940_vm2, %v4939_v60  ;;  %4472 = vmatprep.subr.mxu1 %v4939_v60 }
 0xe2b   :  { %4469 = vmatprep.mubr.msk.f32.mxu0 %vm4940_vm2, %v4939_v60  ;;  %4477 = vmatprep.subr.mxu0 %v4939_v60 }
 0xe2c   :  { %4465 = vmatmul.mubr.msk.f32.vlgmr.msra.gmra.mrb[24].mxu1 %vm407_vm3, %v2176_v50 }
 0xe2d   :  { %4473 = vmatpush3.msra.mxu1 %v5693_v3  ;;  %4474 = vmatprep.mubr.msk.f32.mxu1 %vm4940_vm2, %v4939_v60 }
 0xe2e   :  { %4482 = vmatprep.subr.mxu1 %v4939_v60 }
 0xe89   :  { %v2269_v49 = vpop.f32.mrb[28].mxu0 }
 0xe8a   :  { %v2270_v8 = vadd.f32 %v2269_v49, %v5265_v36  ;;  %v4431_v57 = vpop.f32.mrb[29].mxu0 }
 0xe8c   :  { %v2805_v26 = vsel %vm1014_vm4, %v2270_v8, -inf }
 0xe8d   :  { %2806 = vmax.xlane.f32.xlu0 %v2805_v26 }
 0xe90   :  { %v2345_v27 = vpop.f32.mrb[30].mxu0 }
 0xe91   :  { %v2346_v28 = vadd.f32 %v2345_v27, %v5272_v42  ;;  %v4436_v34 = vpop.f32.mrb[31].mxu0 }
 0xe93   :  { %v2808_v15 = vsel %vm1014_vm4, %v2346_v28, -inf }
 0xe94   :  { %2809 = vmax.xlane.f32.xlu1 %v2808_v15 }
 0xef3   :  { %v2421_v19 = vpop.f32.mrb[32].mxu0 }
 0xef4   :  { %v2422_v21 = vadd.f32 %v2421_v19, %v5279_v47  ;;  %v4441_v24 = vpop.f32.mrb[33].mxu0 }
 0xef6   :  { %v2811_v1 = vsel %vm1014_vm4, %v2422_v21, -inf }
 0xef7   :  { %v2497_v25 = vpop.f32.mrb[20].mxu1  ;;  %2812 = vmax.xlane.f32.xlu0 %v2811_v1  ;;  %v2573_v36 = vpop.f32.mrb[34].mxu0 }
 0xef8   :  { %v2498_v35 = vadd.f32 %v2497_v25, %v5285_v51  ;;  %v4446_v40 = vpop.f32.mrb[21].mxu1  ;;  %v4451_v43 = vpop.f32.mrb[35].mxu0  ;;  %v2574_v45 = vadd.f32 %v2573_v36, %v5291_v54 }
 0xefa   :  { %v2814_v42 = vsel %vm1014_vm4, %v2498_v35, -inf  ;;  %v2817_v53 = vsel %vm1014_vm4, %v2574_v45, -inf }
 0xefb   :  { %v2649_v32 = vpop.f32.mrb[22].mxu1  ;;  %2815 = vmax.xlane.f32.xlu0 %v2814_v42  ;;  %v2725_v6 = vpop.f32.mrb[36].mxu0 }
 0xefc   :  { %v2650_v46 = vadd.f32 %v2649_v32, %v5297_v62  ;;  %v4456_v47 = vpop.f32.mrb[23].mxu1  ;;  %v4461_v50 = vpop.f32.mrb[37].mxu0  ;;  %v2726_v44 = vadd.f32 %v2725_v6, %v5304_v4 }
 0xefe   :  { %v2820_v52 = vsel %vm1014_vm4, %v2650_v46, -inf  ;;  %v2823_v23 = vsel %vm1014_vm4, %v2726_v44, -inf }
 0xeff   :  { %v2801_v51 = vpop.f32.mrb[24].mxu1  ;;  %2821 = vmax.xlane.f32.xlu1 %v2820_v52  ;;  %2818 = vmax.xlane.f32.xlu0 %v2817_v53 }
 0xf00   :  { %v2802_v54 = vadd.f32 %v2801_v51, %v5310_v10  ;;  %v4466_v12 = vpop.f32.mrb[25].mxu1 }
 0xf02   :  { %v2826_v7 = vsel %vm1014_vm4, %v2802_v54, -inf }
 0xf03   :  { %2827 = vmax.xlane.f32.xlu1 %v2826_v7  ;;  %2824 = vmax.xlane.f32.xlu0 %v2823_v23 }
 0xf14   :  { %2181 = vrot.lane.b32.xlu1 %v5693_v3, %s4942_s3 }
 0xf18   :  { %2185 = vrot.lane.b32.xlu1 %v5681_v55, %s4941_s27 }
 0xf19   :  { %2179 = vrot.lane.b32.xlu0 %v5681_v55, %s4942_s3 }
 0xf1a   :  { %v2807_v62 = vpop.xlane.xlu0 %2806 }
 0xf1b   :  { %v2829_v4 = vsub.f32 %v2270_v8, %v2807_v62 }
 0xf1c   :  { %2187 = vrot.lane.b32.xlu1 %v5693_v3, %s4941_s27 }
 0xf1d   :  { %v2837_v10 = vmul.f32 1.442695, %v2829_v4 }
 0xf1f   :  { %4869 = vpow2.f32 %v2837_v10 }
 0xf21   :  { %v2810_v58 = vpop.xlane.xlu1 %2809 }
 0xf22   :  { %v2830_v49 = vsub.f32 %v2346_v28, %v2810_v58 }
 0xf24   :  { %v2839_v57 = vmul.f32 1.442695, %v2830_v49 }
 0xf26   :  { %4871 = vpow2.f32 %v2839_v57 }
 0xf29   :  { %v4870_v26 = vpop.eup %4869 }
 0xf2a   :  { %v2853_v27 = vsel %vm1014_vm4, %v4870_v26, 0.0 }
 0xf30   :  { %v4872_v34 = vpop.eup %4871 }
 0xf31   :  { %v2856_v15 = vsel %vm1014_vm4, %v4872_v34, 0.0 }
 0xf38   :  { %2854 = vadd.xlane.f32.xlu0 %v2853_v27 }
 0xf40   :  { %2857 = vadd.xlane.f32.xlu1 %v2856_v15 }
 0xf84   :  { %v2813_v19 = vpop.xlane.xlu0 %2812 }
 0xf85   :  { %v2831_v24 = vsub.f32 %v2422_v21, %v2813_v19 }
 0xf87   :  { %v2841_v1 = vmul.f32 1.442695, %v2831_v24 }
 0xf88   :  { %v2816_v25 = vpop.xlane.xlu0 %2815 }
 0xf89   :  { %4873 = vpow2.f32 %v2841_v1  ;;  %v2832_v8 = vsub.f32 %v2498_v35, %v2816_v25 }
 0xf8b   :  { %v2843_v36 = vmul.f32 1.442695, %v2832_v8 }
 0xf8c   :  { %v2822_v40 = vpop.xlane.xlu1 %2821  ;;  %v2819_v43 = vpop.xlane.xlu0 %2818 }
 0xf8d   :  { %4875 = vpow2.f32 %v2843_v36  ;;  %v2834_v28 = vsub.f32 %v2650_v46, %v2822_v40  ;;  %v2833_v42 = vsub.f32 %v2574_v45, %v2819_v43 }
 0xf8f   :  { %v2847_v32 = vmul.f32 1.442695, %v2834_v28  ;;  %v2845_v6 = vmul.f32 1.442695, %v2833_v42 }
 0xf90   :  { %v2828_v47 = vpop.xlane.xlu1 %2827  ;;  %v2825_v50 = vpop.xlane.xlu0 %2824 }
 0xf91   :  { %4877 = vpow2.f32 %v2847_v32  ;;  %v2836_v52 = vsub.f32 %v2802_v54, %v2828_v47  ;;  %v2835_v53 = vsub.f32 %v2726_v44, %v2825_v50 }
 0xf92   :  { %4879 = vpow2.f32 %v2845_v6 }
 0xf93   :  { %v4874_v51 = vpop.eup %4873  ;;  %v2851_v21 = vmul.f32 1.442695, %v2836_v52  ;;  %v2849_v12 = vmul.f32 1.442695, %v2835_v53 }
 0xf94   :  { %v2859_v7 = vsel %vm1014_vm4, %v4874_v51, 0.0  ;;  %v2182_v49 = vpop.permute.xlu1 %2181  ;;  %v2180_v57 = vpop.permute.xlu0 %2179 }
 0xf95   :  { %4881 = vpow2.f32 %v2851_v21  ;;  %2860 = vadd.xlane.f32.xlu0 %v2859_v7 }
 0xf96   :  { %4883 = vpow2.f32 %v2849_v12 }
 0xf97   :  { %v4876_v35 = vpop.eup %4875 }
 0xf98   :  { %v2862_v46 = vsel %vm1014_vm4, %v4876_v35, 0.0  ;;  %v2186_v27 = vpop.permute.xlu1 %2185 }
 0xf99   :  { %2863 = vadd.xlane.f32.xlu1 %v2862_v46 }
 0xf9b   :  { %v4878_v45 = vpop.eup %4877 }
 0xf9c   :  { %v4880_v23 = vpop.eup %4879  ;;  %v2868_v62 = vsel %vm1014_vm4, %v4878_v45, 0.0  ;;  %v2188_v19 = vpop.permute.xlu1 %2187 }
 0xf9d   :  { %2869 = vadd.xlane.f32.xlu1 %v2868_v62  ;;  %v2865_v44 = vsel %vm1014_vm4, %v4880_v23, 0.0 }
 0xf9e   :  { %2866 = vadd.xlane.f32.xlu0 %v2865_v44 }
 0xf9f   :  { %v5733_v54 = vpop.eup %4881 }
 0xfa0   :  { %v5735_v4 = vpop.eup %4883  ;;  %v2874_v10 = vsel %vm1014_vm4, %v5733_v54, 0.0 }
 0xfa1   :  { %2875 = vadd.xlane.f32.xlu1 %v2874_v10  ;;  %v2871_v58 = vsel %vm1014_vm4, %v5735_v4, 0.0 }
 0xfa2   :  { %2872 = vadd.xlane.f32.xlu0 %v2871_v58 }
 0xfb2   :  { %2193 = vrot.lane.b32.xlu1 %v5693_v3, %s4943_s7 }
 0xfb8   :  { %2191 = vrot.lane.b32.xlu0 %v5681_v55, %s4943_s7 }
 0xfc5   :  { %v2855_v15 = vpop.xlane.xlu0 %2854 }
 0xfc6   :  { %4885 = vrcp.f32 %v2855_v15 }
 0xfcd   :  { %v2858_v24 = vpop.xlane.xlu1 %2857 }
 0xfce   :  { %4887 = vrcp.f32 %v2858_v24 }
 0xfd0   :  { %v4886_v1 = vpop.eup %4885 }
 0xfd1   :  { %v2885_v25 = vmul.f32 %v4886_v1, %v4870_v26 }
 0xfd3   :  { %4470 = vmatmul.mubr.msk.f32.vlgmr.msra.gmra.mrb[38].mxu0 %vm1014_vm4, %v2885_v25 }
 0xfd4   :  { %4478 = vmatpush3.msra.mxu0 %v2180_v57  ;;  %4479 = vmatprep.mubr.msk.f32.mxu0 %vm4940_vm2, %v4939_v60 }
 0xfd5   :  { %4487 = vmatprep.subr.mxu0 %v4939_v60 }
 0xfd8   :  { %v4888_v3 = vpop.eup %4887 }
 0xfd9   :  { %v2886_v55 = vmul.f32 %v4888_v3, %v4872_v34 }
 0xfdb   :  { %4475 = vmatmul.mubr.msk.f32.vlgmr.msra.gmra.mrb[26].mxu1 %vm1014_vm4, %v2886_v55 }
 0xfdc   :  { %4483 = vmatpush3.msra.mxu1 %v2182_v49  ;;  %4484 = vmatprep.mubr.msk.f32.mxu1 %vm4940_vm2, %v4939_v60 }
 0xfdd   :  { %4492 = vmatprep.subr.mxu1 %v4939_v60 }
0x1022   :  { %v2861_v8 = vpop.xlane.xlu0 %2860 }
0x1023   :  { %4889 = vrcp.f32 %v2861_v8 }
0x1026   :  { %v2864_v26 = vpop.xlane.xlu1 %2863 }
0x1027   :  { %4891 = vrcp.f32 %v2864_v26 }
0x102a   :  { %v2870_v36 = vpop.xlane.xlu1 %2869 }
0x102b   :  { %4893 = vrcp.f32 %v2870_v36  ;;  %v2867_v40 = vpop.xlane.xlu0 %2866 }
0x102c   :  { %4895 = vrcp.f32 %v2867_v40 }
0x102d   :  { %v4890_v43 = vpop.eup %4889 }
0x102e   :  { %v2887_v28 = vmul.f32 %v4890_v43, %v4874_v51  ;;  %v2876_v42 = vpop.xlane.xlu1 %2875 }
0x102f   :  { %4897 = vrcp.f32 %v2876_v42  ;;  %v2873_v34 = vpop.xlane.xlu0 %2872 }
0x1030   :  { %4899 = vrcp.f32 %v2873_v34  ;;  %4480 = vmatmul.mubr.msk.f32.vlgmr.msra.gmra.mrb[40].mxu0 %vm1014_vm4, %v2887_v28 }
0x1031   :  { %v4892_v32 = vpop.eup %4891  ;;  %4488 = vmatpush3.msra.mxu0 %v2186_v27  ;;  %4489 = vmatprep.mubr.msk.f32.mxu0 %vm4940_vm2, %v4939_v60 }
0x1032   :  { %v2888_v6 = vmul.f32 %v4892_v32, %v4876_v35  ;;  %4497 = vmatprep.subr.mxu0 %v4939_v60  ;;  %v2194_v51 = vpop.permute.xlu1 %2193 }
0x1033   :  { %v2192_v12 = vpop.permute.xlu0 %2191 }
0x1034   :  { %4485 = vmatmul.mubr.msk.f32.vlgmr.msra.gmra.mrb[28].mxu1 %vm1014_vm4, %v2888_v6 }
0x1035   :  { %v4894_v47 = vpop.eup %4893  ;;  %4493 = vmatpush3.msra.mxu1 %v2188_v19  ;;  %4494 = vmatprep.mubr.msk.f32.mxu1 %vm4940_vm2, %v4939_v60 }
0x1036   :  { %v4896_v50 = vpop.eup %4895  ;;  %v2890_v52 = vmul.f32 %v4894_v47, %v4878_v45  ;;  %4502 = vmatprep.subr.mxu1 %v4939_v60 }
0x1037   :  { %v2889_v53 = vmul.f32 %v4896_v50, %v4880_v23 }
0x1038   :  { %4495 = vmatmul.mubr.msk.f32.vlgmr.msra.gmra.mrb[30].mxu1 %vm1014_vm4, %v2890_v52 }
0x1039   :  { %v4898_v21 = vpop.eup %4897  ;;  %4490 = vmatmul.mubr.msk.f32.vlgmr.msra.gmra.mrb[42].mxu0 %vm1014_vm4, %v2889_v53  ;;  %4503 = vmatpush3.msra.mxu1 %v2194_v51 }
0x103a   :  { %v4900_v7 = vpop.eup %4899  ;;  %v2892_v35 = vmul.f32 %v4898_v21, %v5733_v54  ;;  %4498 = vmatpush3.msra.mxu0 %v2192_v12  ;;  %4499 = vmatprep.mubr.msk.f32.mxu0 %vm4940_vm2, %v4939_v60 }
0x103b   :  { %v2891_v46 = vmul.f32 %v4900_v7, %v5735_v4  ;;  %4504 = vmatprep.mubr.msk.f32.mxu1 %vm4940_vm2, %v4939_v60  ;;  %4723 = vmatprep.subr.bf16.mxu0 %v5376_v9 }
0x103c   :  { %4505 = vmatmul.mubr.msk.f32.vlgmr.msra.gmra.mrb[32].mxu1 %vm1014_vm4, %v2892_v35  ;;  %4739 = vmatprep.subr.bf16.mxu1 %v5443_v30 }
0x103d   :  { %4500 = vmatmul.mubr.msk.f32.vlgmr.msra.gmra.mrb[44].mxu0 %vm1014_vm4, %v2891_v46  ;;  %4741 = vmatpush3.bf16.msra.mxu1 %v5443_v30 }
0x103e   :  { %4725 = vmatpush3.bf16.msra.mxu0 %v5376_v9  ;;  %4743 = vmatprep.subr.bf16.mxu1 %v5453_v38 }
0x103f   :  { %4727 = vmatprep.subr.bf16.mxu0 %v5386_v14 }
0x1041   :  { %4745 = vmatpush3.bf16.msra.mxu1 %v5453_v38 }
0x1042   :  { %4729 = vmatpush3.bf16.msra.mxu0 %v5386_v14  ;;  %4747 = vmatprep.subr.bf16.mxu1 %v5463_v41 }
0x1043   :  { %4731 = vmatprep.subr.bf16.mxu0 %v5396_v17 }
0x1045   :  { %4749 = vmatpush3.bf16.msra.mxu1 %v5463_v41 }
0x1046   :  { %4733 = vmatpush3.bf16.msra.mxu0 %v5396_v17  ;;  %4751 = vmatprep.subr.bf16.mxu1 %v5473_v39 }
0x1047   :  { %4735 = vmatprep.subr.bf16.mxu0 %v5406_v20 }
0x1049   :  { %4753 = vmatpush3.bf16.msra.mxu1 %v5473_v39 }
0x104a   :  { %4737 = vmatpush3.bf16.msra.mxu0 %v5406_v20 }
0x104b   :  { %4755 = vmatprep.subr.bf16.mxu0 %v5484_v48 }
0x10a6   :  { %v2962_v9 = vpop.f32.mrb[38].mxu0 }
0x10a7   :  { %v4471_v14 = vpop.f32.mrb[39].mxu0 }
0x10ae   :  { %v3035_v30 = vpop.f32.mrb[26].mxu1 }
0x10af   :  { %v4476_v38 = vpop.f32.mrb[27].mxu1 }
0x1103   :  { %v3108_v45 = vpop.f32.mrb[40].mxu0 }
0x1104   :  { %3479 = vrot.lane.b32.xlu0 %v3108_v45, %s4945_s26  ;;  %v4481_v41 = vpop.f32.mrb[41].mxu0 }
0x1107   :  { %v3181_v23 = vpop.f32.mrb[28].mxu1 }
0x1108   :  { %3481 = vrot.lane.b32.xlu1 %v3181_v23, %s4945_s26  ;;  %v4486_v17 = vpop.f32.mrb[29].mxu1 }
0x110b   :  { %v3327_v62 = vpop.f32.mrb[30].mxu1 }
0x110c   :  { %v3254_v44 = vpop.f32.mrb[42].mxu0  ;;  %3489 = vrot.lane.b32.xlu1 %v3327_v62, %s4946_s28  ;;  %v4496_v39 = vpop.f32.mrb[31].mxu1 }
0x110d   :  { %3487 = vrot.lane.b32.xlu0 %v3254_v44, %s4946_s28  ;;  %v4491_v20 = vpop.f32.mrb[43].mxu0 }
0x110f   :  { %v3473_v54 = vpop.f32.mrb[32].mxu1 }
0x1110   :  { %v3400_v4 = vpop.f32.mrb[44].mxu0  ;;  %3497 = vrot.lane.b32.xlu1 %v3473_v54, %s4947_s8  ;;  %v4506_v10 = vpop.f32.mrb[33].mxu1 }
0x1111   :  { %3495 = vrot.lane.b32.xlu0 %v3400_v4, %s4947_s8  ;;  %v4501_v58 = vpop.f32.mrb[45].mxu0 }
0x1176   :  { %v3480_v57 = vpop.permute.xlu0 %3479 }
0x1177   :  { %v3501_v24 = vsel %vm407_vm3, %v2962_v9, %v3480_v57 }
0x117a   :  { %v3482_v49 = vpop.permute.xlu1 %3481 }
0x117b   :  { %v3502_v19 = vsel %vm407_vm3, %v3035_v30, %v3482_v49 }
0x117e   :  { %v3490_v27 = vpop.permute.xlu1 %3489 }
0x117f   :  { %v3488_v15 = vpop.permute.xlu0 %3487  ;;  %v3504_v1 = vsel %vm76_vm0, %v3502_v19, %v3490_v27 }
0x1180   :  { %v3503_v3 = vsel %vm76_vm0, %v3501_v24, %v3488_v15 }
0x1182   :  { %v3498_v25 = vpop.permute.xlu1 %3497 }
0x1183   :  { %v3506_v55 = vsel %vm1715_vm5, %v3504_v1, %v3498_v25  ;;  %v3496_v8 = vpop.permute.xlu0 %3495 }
0x1184   :  { %v3505_v26 = vsel %vm1715_vm5, %v3503_v3, %v3496_v8 }
0x1185   :  { %4523 = vmatprep.mubr.msk.f32.mxu0 %vm287_vm1, %v3505_v26 }
0x1186   :  { %4524 = vmatmul.mubr.msk.f32.vlgmr.msra.gmra.mrb[46].mxu0 %vm287_vm1, %v3506_v55 }
0x1187   :  { %4757 = vmatpush3.bf16.msra.mxu0 %v5484_v48 }
0x1188   :  { %4759 = vmatprep.subr.bf16.mxu0 %v5525_v13 }
0x118b   :  { %4761 = vmatpush3.bf16.msra.mxu0 %v5525_v13 }
0x118c   :  { %4763 = vmatprep.subr.bf16.mxu0 %v5535_v37 }
0x118f   :  { %4765 = vmatpush3.bf16.msra.mxu0 %v5535_v37 }
0x1190   :  { %4767 = vmatprep.subr.bf16.mxu0 %v5545_v11 }
0x1193   :  { %4769 = vmatpush3.bf16.msra.mxu0 %v5545_v11 }
0x1194   :  { %4771 = vmatprep.subr.bf16.mxu0 %v5553_v18 }
0x1197   :  { %4773 = vmatpush3.bf16.msra.mxu0 %v5553_v18 }
0x1198   :  { %4775 = vmatprep.subr.bf16.mxu0 %v5564_v22 }
0x119b   :  { %4777 = vmatpush3.bf16.msra.mxu0 %v5564_v22 }
0x119c   :  { %4779 = vmatprep.subr.bf16.mxu0 %v5574_v0 }
0x119f   :  { %4781 = vmatpush3.bf16.msra.mxu0 %v5574_v0 }
0x11a0   :  { %4783 = vmatprep.subr.bf16.mxu0 %v5584_v31 }
0x11a3   :  { %4785 = vmatpush3.bf16.msra.mxu0 %v5584_v31 }
0x1259   :  { %v4525_v48 = vpop.f32.mrb[46].mxu0 }
0x125a   :  { %v3585_v13 = vadd.f32 %v4525_v48, %v5427_v2  ;;  %v3579_v37 = vpop.f32.mrb[47].mxu0 }
0x125b   :  { %v3580_v11 = vadd.f32 %v5427_v2, %v3579_v37 }
0x125c   :  { %v3589_v18 = vadd.f32 %v3585_v13, %v5631_v16 }
0x125d   :  { %v3588_v36 = vadd.f32 %v3580_v11, %v5624_v56 }
0x125e   :  { %v3593_v22 = vsel %vm287_vm1, %v3589_v18, 0.0 }
0x125f   :  { %3594 = vadd.xlane.f32.xlu1 %v3593_v22  ;;  %v3590_v40 = vsel %vm287_vm1, %v3588_v36, 0.0 }
0x1260   :  { %3591 = vadd.xlane.f32.xlu0 %v3590_v40 }
0x12ec   :  { %v3595_v0 = vpop.xlane.xlu1 %3594 }
0x12ed   :  { %v3597_v43 = vmul.f32 0.015625, %v3595_v0  ;;  %v3592_v28 = vpop.xlane.xlu0 %3591 }
0x12ee   :  { %v3596_v31 = vmul.f32 0.015625, %v3592_v28 }
0x12ef   :  { %v3599_v42 = vsub.f32 %v3589_v18, %v3597_v43 }
0x12f0   :  { %v3598_v34 = vsub.f32 %v3588_v36, %v3596_v31  ;;  %v3831_v31 = vld [vmem:[%s5933_s18] sm:$0xff] }
0x12f1   :  { %v3601_v2 = vmul.f32 %v3599_v42, %v3599_v42 }
0x12f2   :  { %v3600_v32 = vmul.f32 %v3598_v34, %v3598_v34 }
0x12f3   :  { %v3605_v16 = vsel %vm287_vm1, %v3601_v2, 0.0  ;;  %v3834_v2 = vld [vmem:[%s5933_s18 + $0x18] sm:$0xff] }
0x12f4   :  { %v3602_v6 = vsel %vm287_vm1, %v3600_v32, 0.0  ;;  %v4948_v32 = vmov 0.0|0.0  }
0x12f5   :  { %3603 = vadd.xlane.f32.xlu0 %v3602_v6  ;;  %4786 = vmatprep.subr.bf16.mxu1 %v4948_v32  ;;  %v3833_v6 = vld [vmem:[%s5933_s18 + $0x10] sm:$0xff] }
0x12f9   :  { %3606 = vadd.xlane.f32.xlu0 %v3605_v16  ;;  %v4790_v16 = vpack.c.bf16 %v3834_v2, %v3833_v6 }
0x1382   :  { %v3604_v56 = vpop.xlane.xlu0 %3603 }
0x1383   :  { %v3608_v47 = vmul.f32 0.015625, %v3604_v56  ;;  %v3835_v56 = vld [vmem:[%s5933_s18 + $0x20] sm:$0xff] }
0x1385   :  { %v3610_v50 = vadd.f32 1e-12, %v3608_v47  ;;  %v3836_v47 = vld [vmem:[%s5933_s18 + $0x28] sm:$0xff] }
0x1386   :  { %v3607_v52 = vpop.xlane.xlu0 %3606 }
0x1387   :  { %4901 = vrsqrt.f32 %v3610_v50  ;;  %v3609_v53 = vmul.f32 0.015625, %v3607_v52  ;;  %v4793_v50 = vpack.c.bf16 %v3836_v47, %v3835_v56  ;;  %v3837_v52 = vld [vmem:[%s5933_s18 + $0x30] sm:$0xff] }
0x1389   :  { %v3611_v51 = vadd.f32 1e-12, %v3609_v53  ;;  %v3838_v53 = vld [vmem:[%s5933_s18 + $0x38] sm:$0xff] }
0x138b   :  { %4903 = vrsqrt.f32 %v3611_v51  ;;  %v4796_v51 = vpack.c.bf16 %v3838_v53, %v3837_v52 }
0x1391   :  { %v4902_v21 = vpop.eup %4901 }
0x1392   :  { %v3614_v12 = vmul.f32 %v4902_v21, %v3598_v34 }
0x1394   :  { %v3616_v7 = vmul.f32 %v5491_v61, %v3614_v12 }
0x1395   :  { %v4904_v35 = vpop.eup %4903 }
0x1396   :  { %v3615_v46 = vmul.f32 %v4904_v35, %v3599_v42  ;;  %v3618_v9 = vadd.f32 %v5496_v5, %v3616_v7  ;;  %v3832_v42 = vld [vmem:[%s5933_s18 + $0x8] sm:$0xff] }
0x1397   :  { %v4787_v34 = vpack.c.bf16 %v3832_v42, %v3831_v31 }
0x1398   :  { %4542 = vmatprep.mubr.msk.f32.mxu1 %vm287_vm1, %v3618_v9  ;;  %v3617_v14 = vmul.f32 %v5491_v61, %v3615_v46 }
0x139a   :  { %v3619_v30 = vadd.f32 %v5496_v5, %v3617_v14 }
0x139c   :  { %4543 = vmatmul.mubr.msk.f32.vlgmr.msra.gmra.mrb[34].mxu1 %vm287_vm1, %v3619_v30 }
0x139d   :  { %4596 = vmatprep.mubr.msk.f32.mxu1 %vm4940_vm2, %v4939_v60  ;;  %4788 = vmatpush3.bf16.msra.mxu1 %v4787_v34 }
0x139e   :  { %4789 = vmatprep.subr.bf16.mxu1 %v4948_v32 }
0x13a1   :  { %4791 = vmatpush3.bf16.msra.mxu1 %v4790_v16 }
0x13a2   :  { %4792 = vmatprep.subr.bf16.mxu1 %v4948_v32 }
0x13a5   :  { %4794 = vmatpush3.bf16.msra.mxu1 %v4793_v50 }
0x13a6   :  { %4795 = vmatprep.subr.bf16.mxu1 %v4948_v32 }
0x13a9   :  { %4797 = vmatpush3.bf16.msra.mxu1 %v4796_v51 }
0x13aa   :  { %4798 = vmatprep.subr.bf16.mxu1 %v4948_v32 }
0x146f   :  { %v4544_v38 = vpop.f32.mrb[34].mxu1 }
0x1470   :  { %v3698_v45 = vadd.f32 %v4544_v38, %v5593_v29  ;;  %v3692_v41 = vpop.f32.mrb[35].mxu1 }
0x1471   :  { %v3693_v23 = vadd.f32 %v5593_v29, %v3692_v41 }
0x1472   :  { %v3704_v17 = vmul.f32 0.044715, %v3698_v45  ;;  %v3702_v19 = vmul.f32 0.5, %v3698_v45 }
0x1473   :  { %v3703_v62 = vmul.f32 0.044715, %v3693_v23  ;;  %v3701_v27 = vmul.f32 0.5, %v3693_v23 }
0x1474   :  { %v3706_v44 = vmul.f32 %v3704_v17, %v3698_v45  ;;  %v3920_v17 = vld [vmem:[%s5935_s20] sm:$0xff] }
0x1475   :  { %v3705_v39 = vmul.f32 %v3703_v62, %v3693_v23  ;;  %v3921_v62 = vld [vmem:[%s5935_s20 + $0x8] sm:$0xff] }
0x1476   :  { %v3708_v20 = vmul.f32 %v3706_v44, %v3698_v45 }
0x1477   :  { %v3707_v54 = vmul.f32 %v3705_v39, %v3693_v23 }
0x1478   :  { %v3710_v61 = vadd.f32 %v3708_v20, %v3698_v45 }
0x1479   :  { %v3709_v4 = vadd.f32 %v3707_v54, %v3693_v23  ;;  %v4799_v54 = vpack.c.bf16 %v3921_v62, %v3920_v17 }
0x147a   :  { %v3712_v5 = vmul.f32 0.7978846, %v3710_v61 }
0x147b   :  { %v3711_v10 = vmul.f32 0.7978846, %v3709_v4  ;;  %v3923_v4 = vld [vmem:[%s5935_s20 + $0x18] sm:$0xff] }
0x147c   :  { %4905 = vtanh.f32 %v3712_v5  ;;  %v3924_v5 = vld [vmem:[%s5935_s20 + $0x20] sm:$0xff] }
0x147d   :  { %4907 = vtanh.f32 %v3711_v10  ;;  %v3925_v10 = vld [vmem:[%s5935_s20 + $0x28] sm:$0xff] }
0x1486   :  { %v4906_v58 = vpop.eup %4905 }
0x1487   :  { %v4908_v49 = vpop.eup %4907  ;;  %v3716_v57 = vadd.f32 1.0, %v4906_v58  ;;  %v3926_v58 = vld [vmem:[%s5935_s20 + $0x30] sm:$0xff] }
0x1488   :  { %v3715_v15 = vadd.f32 1.0, %v4908_v49  ;;  %v3927_v49 = vld [vmem:[%s5935_s20 + $0x38] sm:$0xff] }
0x1489   :  { %v3718_v29 = vmul.f32 %v3716_v57, %v3702_v19  ;;  %v4808_v57 = vpack.c.bf16 %v3927_v49, %v3926_v58 }
0x148a   :  { %v3717_v24 = vmul.f32 %v3715_v15, %v3701_v27  ;;  %v4095_v27 = vld [vmem:[%s5934_s19] ss:$0 sm:$0xff] }
0x148c   :  { %4577 = vmatprep.mubr.f32.mxu0 %v3717_v24 }
0x148d   :  { %4578 = vmatmul.mubr.f32.vlgmr.msra.gmra.mrb[48].mxu0 %v3718_v29 }
0x1560   :  { %v4579_v1 = vpop.f32.mrb[48].mxu0 }
0x1561   :  { %v3791_v25 = vadd.f32 %v4579_v1, %v5602_v59  ;;  %v3785_v3 = vpop.f32.mrb[49].mxu0  ;;  %v4097_v1 = vld [vmem:[%s5936_s21] ss:$0 sm:$0xff] }
0x1562   :  { %v3786_v55 = vadd.f32 %v5602_v59, %v3785_v3 }
0x1563   :  { %v3795_v8 = vadd.f32 %v3791_v25, %v3619_v30 }
0x1564   :  { %v3794_v26 = vadd.f32 %v3786_v55, %v3618_v9 }
0x1565   :  { %v3799_v48 = vsel %vm287_vm1, %v3795_v8, 0.0 }
0x1566   :  { %3800 = vadd.xlane.f32.xlu0 %v3799_v48  ;;  %v3796_v13 = vsel %vm287_vm1, %v3794_v26, 0.0 }
0x1567   :  { %3797 = vadd.xlane.f32.xlu1 %v3796_v13 }
0x15f3   :  { %v3801_v37 = vpop.xlane.xlu0 %3800 }
0x15f4   :  { %v3803_v11 = vmul.f32 0.015625, %v3801_v37  ;;  %v3798_v18 = vpop.xlane.xlu1 %3797 }
0x15f5   :  { %v3802_v36 = vmul.f32 0.015625, %v3798_v18 }
0x15f6   :  { %v3805_v22 = vsub.f32 %v3795_v8, %v3803_v11 }
0x15f7   :  { %v3804_v40 = vsub.f32 %v3794_v26, %v3802_v36 }
0x15f8   :  { %v3807_v0 = vmul.f32 %v3805_v22, %v3805_v22 }
0x15f9   :  { %v3806_v43 = vmul.f32 %v3804_v40, %v3804_v40 }
0x15fa   :  { %v3811_v28 = vsel %vm287_vm1, %v3807_v0, 0.0 }
0x15fb   :  { %3812 = vadd.xlane.f32.xlu0 %v3811_v28  ;;  %v3808_v59 = vsel %vm287_vm1, %v3806_v43, 0.0 }
0x15fc   :  { %3809 = vadd.xlane.f32.xlu1 %v3808_v59 }
0x1688   :  { %v3813_v21 = vpop.xlane.xlu0 %3812 }
0x1689   :  { %v3815_v12 = vmul.f32 0.015625, %v3813_v21  ;;  %v3810_v7 = vpop.xlane.xlu1 %3809 }
0x168a   :  { %v3814_v35 = vmul.f32 0.015625, %v3810_v7 }
0x168b   :  { %v3817_v46 = vadd.f32 1e-12, %v3815_v12 }
0x168c   :  { %v3816_v9 = vadd.f32 1e-12, %v3814_v35 }
0x168d   :  { %4909 = vrsqrt.f32 %v3817_v46 }
0x168e   :  { %4911 = vrsqrt.f32 %v3816_v9 }
0x1697   :  { %v4910_v14 = vpop.eup %4909 }
0x1698   :  { %v4912_v30 = vpop.eup %4911  ;;  %v3821_v38 = vmul.f32 %v4910_v14, %v3805_v22 }
0x1699   :  { %v3820_v45 = vmul.f32 %v4912_v30, %v3804_v40 }
0x169a   :  { %v3823_v41 = vmul.f32 %v5615_v63, %v3821_v38 }
0x169b   :  { %v3822_v23 = vmul.f32 %v5615_v63, %v3820_v45  ;;  %v3922_v63 = vld [vmem:[%s5935_s20 + $0x10] sm:$0xff]  ;;  %s4949_s20 = smov [#allocation2]  }
0x169c   :  { %v3825_v44 = vadd.f32 %v5620_v33, %v3823_v41  ;;  %s4015_s5 = sshll.u32 %s4949_s20, 4  ;;  %s4016_s5 = int_to_ptr.vmem [resolvable:$true] %s4015_s5 }
0x169d   :  { %v3824_v39 = vadd.f32 %v5620_v33, %v3822_v23  ;;  %v4802_v33 = vpack.c.bf16 %v3923_v4, %v3922_v63  ;;  %s4915_s0 = scalar_lea.vmem %s4016_s5, 32  ;;  %p4920_p1 = scmp.lt.s32.totalorder %s4016_s5, %s4016_s5 }
0x169e   :  { %v3827_v20 = vrot.slane %v3825_v44, 7  ;;  %p4916_p0 = scmp.ne.s32.totalorder %s4016_s5, %s4915_s0  ;;  %p4921_p2 = scmp.lt.s32.totalorder %s4915_s0, %s4915_s0 }
0x16a0   :  { %v3830_v61 = vsel %vm3829_vm6, %v3824_v39, %v3827_v20  ;;  %p4922_p3 = por %p4921_p2, %p4920_p1 }
0x16a1   :  { %4597 = vmatmul.mubr.msk.f32.vlgmr.msra.gmra.mrb[36].mxu1 %vm287_vm1, %v3830_v61 }
0x16a2   :  { %4800 = vmatpush3.bf16.msra.mxu1 %v4799_v54  ;;  %4615 = vmatprep.mubr.msk.f32.mxu1 %vm4940_vm2, %v4939_v60  ;;  %v4805_v60 = vpack.c.bf16 %v3925_v10, %v3924_v5  ;;  %p4923_p4 = pnand %p4922_p3, %p4916_p0 }
0x16a3   :  { %4801 = vmatprep.subr.bf16.mxu1 %v4948_v32 }
0x16a6   :  { %4803 = vmatpush3.bf16.msra.mxu1 %v4802_v33 }
0x16a7   :  { %4804 = vmatprep.subr.bf16.mxu1 %v4948_v32 }
0x16aa   :  { %4806 = vmatpush3.bf16.msra.mxu1 %v4805_v60 }
0x16ab   :  { %4807 = vmatprep.subr.bf16.mxu1 %v4948_v32 }
0x16ae   :  { %4809 = vmatpush3.bf16.msra.mxu1 %v4808_v57 }
0x1774   :  { %v3915_v15 = vpop.f32.mrb[36].mxu1 }
0x1775   :  { %v3916_v19 = vadd.f32 %v4095_v27, %v3915_v15  ;;  %v4598_v24 = vpop.f32.mrb[37].mxu1 }
0x1777   :  { %4913 = vtanh.f32 %v3916_v19 }
0x1781   :  { %v4914_v29 = vpop.eup %4913 }
0x1782   :  { %4616 = vmatmul.mubr.msk.f32.vlgmr.msra.gmra.mrb[38].mxu1 %vm287_vm1, %v4914_v29 }
0x1855   :  { %v4004_v25 = vpop.f32.mrb[38].mxu1 }
0x1856   :  { %v4005_v3 = vadd.f32 %v4097_v1, %v4004_v25  ;;  %v4617_v55 = vpop.f32.mrb[39].mxu1 }
0x1858   :  { %4008 = vst [vmem:[#allocation2] sm:$0x3] %v4005_v3 }
0x1859   :  { %4926 = shalt.err (!%p4923_p4)
}
0x185a   :  { %s4927_s6 = scalar_lea.hbm %s5937_s22, 32 }
0x185b   :  { %p4928_p5 = scmp.ne.s32.totalorder %s5937_s22, %s4927_s6  ;;  %p4931_p6 = scmp.lt.u32.totalorder %s4927_s6, %s5937_s22 }
0x185d   :  { %p4933_p7 = pnand %p4931_p6, %p4928_p5 }
0x185f   :  { %4936 = shalt.err (!%p4933_p7)
}
0x1860   :  { %4018 = dma.vmem_to_hbm [thread:$0]  %s4016_s5, 32, %s5937_s22, [#allocation3]  }
0x1861   :  { %4937 = dma.done.wait [#allocation3], 32  }
0x1862   :  { %4938 = vsyncadd [#allocation3], 4294967264 }
0x1863   :  { %4022 = vsyncpa [#allocation3], 1 }

</bundles_post_ra>
